<compile_context>
chip_gen: v6e
topology: v6e:2x2x1
jax: 0.10.0
libtpu: 0.0.40
codegen_flags: <defaults>
</compile_context>

<pallas_src>
import jax
import jax.numpy as jnp
import numpy as np
from jax import lax
from jax.experimental import pallas as pl
from jax.experimental.pallas import tpu as pltpu


def _sigmoid(x):
    return 1.0 / (1.0 + jnp.exp(-x))


def interatt_kernel(x1_ref, x2_ref, gw_ref, out_ref):
    # x1_ref/x2_ref : (1, C, HW)   gw_ref : (1, C) == gate_w * conv_w (folded)
    x1 = x1_ref[0]          # (C, HW)
    x2 = x2_ref[0]          # (C, HW)

    # A[i, j]  = sum_c x1[c, i] * x2[c, j]   (== bmm(x1_t, x2_flat) per batch)
    A = lax.dot_general(x1, x2, (((0,), (0,)), ((), ())),
                        preferred_element_type=jnp.float32)    # (HW_i, HW_j)
    # At[j, i] = A[i, j], recomputed via a second tiny K=C MXU matmul rather than
    # transposing the HWxHW matrix (MXU is <2% utilized, XLU/VMEM are not).
    At = lax.dot_general(x2, x1, (((0,), (0,)), ((), ())),
                         preferred_element_type=jnp.float32)   # (HW_j, HW_i)

    # Unnormalized, per-column-stabilized softmax numerators.
    E  = jnp.exp(A  - jnp.max(A,  axis=0, keepdims=True))      # (HW_i, HW_j)
    Et = jnp.exp(At - jnp.max(At, axis=0, keepdims=True))      # (HW_j, HW_i)
    d1 = jnp.sum(E,  axis=0, keepdims=True)                    # (1, HW_j)
    d2 = jnp.sum(Et, axis=0, keepdims=True)                    # (1, HW_i)

    # Attention matmuls against the *unnormalized* E / Et (native MK@KN
    # orientation, no transposes), then fold the denominators into the small
    # (C, HW) results.  Only 2*HW reciprocals remain -> put them on the EUP.
    n1 = jnp.dot(x1, E,  preferred_element_type=jnp.float32)   # (C, HW_j)
    n2 = jnp.dot(x2, Et, preferred_element_type=jnp.float32)   # (C, HW_i)
    x2_att = n1 * pl.reciprocal(d1, approx=True)               # (C, HW_j)
    x1_att = n2 * pl.reciprocal(d2, approx=True)               # (C, HW_i)

    x1_mask = _sigmoid(x1_att)
    x2_mask = _sigmoid(x2_att)

    # Fused gating epilogue: out1 + out2 = (gw*cw) @ (m1 + m2); lane-dense (1, HW).
    m = x1_mask * x1 + x2_mask * x2                            # (C, HW)
    out_ref[0] = jnp.dot(gw_ref[...], m, preferred_element_type=jnp.float32)


def interattention_forward(x1, x2, gate_w, conv_w):
    """x1, x2: (B, C, H, W) f32; gate_w: (1, C, 1, 1); conv_w: (1, 1, 1, 1)."""
    B, C, H, W = x1.shape
    HW = H * W
    x1f = x1.reshape(B, C, HW).astype(jnp.float32)
    x2f = x2.reshape(B, C, HW).astype(jnp.float32)
    # Fold the final 1x1 conv (scalar, no bias) into the gate weight.
    gwcw = (gate_w.reshape(1, C) * conv_w.reshape(())).astype(jnp.float32)

    # VMEM guard: the kernel holds a few (HW, HW) f32 intermediates per batch
    # step.  Fine at HW=256 (~1 MiB); at realistic resolutions (HW=4096 -> 64 MiB
    # each) this would blow past v7x's VMEM.
    approx_vmem = 4 * HW * HW * 4 + 8 * C * HW * 4
    if approx_vmem > 24 * 1024 * 1024:
        # TODO(synk): tile the key (second HW) axis with flash-style online
        # max/sum accumulation for large spatial sizes.
        raise NotImplementedError(
            f"HW={HW}: (HW,HW) intermediates (~{approx_vmem >> 20} MiB) exceed "
            "the single-block VMEM budget; key-axis tiling not implemented.")

    out = pl.pallas_call(
        interatt_kernel,
        out_shape=jax.ShapeDtypeStruct((B, 1, HW), jnp.float32),
        grid_spec=pltpu.PrefetchScalarGridSpec(
            num_scalar_prefetch=0,
            grid=(B,),
            in_specs=[
                pl.BlockSpec((1, C, HW), lambda b: (b, 0, 0)),
                pl.BlockSpec((1, C, HW), lambda b: (b, 0, 0)),
                pl.BlockSpec((1, C), lambda b: (0, 0)),
            ],
            out_specs=pl.BlockSpec((1, 1, HW), lambda b: (b, 0, 0)),
        ),
        # Batch axis is independent -> "parallel" lets the two v7x TensorCores
        # each take a batch (no effect on single-TC v5e/v6e).
        compiler_params=pltpu.CompilerParams(
            dimension_semantics=("parallel",)),
    )(x1f, x2f, gwcw)
    return out.reshape(B, 1, H, W)


def _reference(x1, x2, gate_w, conv_w):
    """Pure-JAX reference matching the PyTorch forward exactly."""
    B, C, H, W = x1.shape
    HW = H * W
    x1f = x1.reshape(B, C, HW)
    x2f = x2.reshape(B, C, HW)
    x1t = jnp.swapaxes(x1f, 1, 2)                     # (B, HW, C)
    A = jnp.einsum('bic,bcj->bij', x1t, x2f)          # (B, HW, HW)
    A1 = jax.nn.softmax(A, axis=1)
    Bm = jax.nn.softmax(jnp.swapaxes(A, 1, 2), axis=1)
    x2_att = jnp.einsum('bci,bij->bcj', x1f, A1).reshape(B, C, H, W)
    x1_att = jnp.einsum('bci,bij->bcj', x2f, Bm).reshape(B, C, H, W)
    x1_mask = jax.nn.sigmoid(x1_att)
    x2_mask = jax.nn.sigmoid(x2_att)
    gw = gate_w.reshape(1, C)
    out1 = jnp.einsum('oc,bchw->bohw', gw, x1_mask * x1)
    out2 = jnp.einsum('oc,bchw->bohw', gw, x2_mask * x2)
    return (out1 + out2) * conv_w.reshape(())


if __name__ == "__main__":
    key = jax.random.PRNGKey(0)
    k1, k2, k3, k4 = jax.random.split(key, 4)

    B, C, H, W = 2, 4, 16, 16
    x1 = jax.random.normal(k1, (B, C, H, W), dtype=jnp.float32)
    x2 = jax.random.normal(k2, (B, C, H, W), dtype=jnp.float32)

    # Conv2d weights, normal_(0, 0.01), no bias.
    gate_w = 0.01 * jax.random.normal(k3, (1, C, 1, 1), dtype=jnp.float32)
    conv_w = 0.01 * jax.random.normal(k4, (1, 1, 1, 1), dtype=jnp.float32)
    # (linear_e weight is defined in __init__ but unused in forward -> omitted)

    out = interattention_forward(x1, x2, gate_w, conv_w)
    out = jax.block_until_ready(out)

    ref = jax.block_until_ready(_reference(x1, x2, gate_w, conv_w))
    assert out.shape == (B, 1, H, W)
    # Tolerance accounts for the approximate EUP reciprocal (pl.reciprocal
    # approx=True, ~1e-4 relative) used for the softmax denominators; any
    # structural error would be orders of magnitude larger.
    np.testing.assert_allclose(np.asarray(out), np.asarray(ref),
                               rtol=2e-3, atol=2e-4)
    print("KERNEL_OK")
</pallas_src>

<mosaic_0001>
module attributes {stable_mosaic.version = 11 : i64} {
  func.func @interatt_kernel(%arg0: i32, %arg1: memref<1x4x256xf32, #tpu.memory_space<vmem>>, %arg2: memref<1x4x256xf32, #tpu.memory_space<vmem>>, %arg3: memref<1x4xf32, #tpu.memory_space<vmem>>, %arg4: memref<1x1x256xf32, #tpu.memory_space<vmem>>) attributes {dimension_semantics = [#tpu.dimension_semantics<parallel>], iteration_bounds = array<i64: 2>, scalar_prefetch = 0 : i64, scratch_operands = 0 : i64, tpu.core_type = #tpu.core_type<tc>, window_params = [{transform_indices = @transform_0, window_bounds = array<i64: 1, 4, 256>}, {transform_indices = @transform_1, window_bounds = array<i64: 1, 4, 256>}, {pipeline_mode = #tpu.pipeline_mode<synchronous>, transform_indices = @transform_2, window_bounds = array<i64: 1, 4>}, {transform_indices = @transform_3, window_bounds = array<i64: 1, 1, 256>}]} {
    %c0 = arith.constant 0 : index
    %c0_0 = arith.constant 0 : index
    %c0_1 = arith.constant 0 : index
    %0 = vector.load %arg1[%c0, %c0_0, %c0_1] : memref<1x4x256xf32, #tpu.memory_space<vmem>>, vector<1x4x256xf32>
    %1 = vector.shape_cast %0 : vector<1x4x256xf32> to vector<4x256xf32>
    %c0_2 = arith.constant 0 : index
    %c0_3 = arith.constant 0 : index
    %c0_4 = arith.constant 0 : index
    %2 = vector.load %arg2[%c0_2, %c0_3, %c0_4] : memref<1x4x256xf32, #tpu.memory_space<vmem>>, vector<1x4x256xf32>
    %3 = vector.shape_cast %2 : vector<1x4x256xf32> to vector<4x256xf32>
    %cst = arith.constant dense<0.000000e+00> : vector<256x256xf32>
    %4 = tpu.matmul %1, %3, %cst {dimension_numbers = #tpu.dot_dimension_numbers<[0], [0], [1], [1], [0, 1, 1, 1], [], []>} : vector<4x256xf32>, vector<4x256xf32>, vector<256x256xf32> -> vector<256x256xf32>
    %cst_5 = arith.constant dense<0.000000e+00> : vector<256x256xf32>
    %5 = tpu.matmul %3, %1, %cst_5 {dimension_numbers = #tpu.dot_dimension_numbers<[0], [0], [1], [1], [0, 1, 1, 1], [], []>} : vector<4x256xf32>, vector<4x256xf32>, vector<256x256xf32> -> vector<256x256xf32>
    %cst_6 = arith.constant dense<0xFF800000> : vector<256xf32>
    %6 = vector.multi_reduction <maximumf>, %4, %cst_6 [0] : vector<256x256xf32> to vector<256xf32>
    %7 = vector.shape_cast %6 : vector<256xf32> to vector<1x256xf32>
    %8 = vector.broadcast %7 : vector<1x256xf32> to vector<256x256xf32>
    %9 = arith.subf %4, %8 : vector<256x256xf32>
    %10 = math.exp %9 : vector<256x256xf32>
    %cst_7 = arith.constant dense<0xFF800000> : vector<256xf32>
    %11 = vector.multi_reduction <maximumf>, %5, %cst_7 [0] : vector<256x256xf32> to vector<256xf32>
    %12 = vector.shape_cast %11 : vector<256xf32> to vector<1x256xf32>
    %13 = vector.broadcast %12 : vector<1x256xf32> to vector<256x256xf32>
    %14 = arith.subf %5, %13 : vector<256x256xf32>
    %15 = math.exp %14 : vector<256x256xf32>
    %cst_8 = arith.constant dense<0.000000e+00> : vector<256xf32>
    %16 = vector.multi_reduction <add>, %10, %cst_8 [0] : vector<256x256xf32> to vector<256xf32>
    %17 = vector.shape_cast %16 : vector<256xf32> to vector<1x256xf32>
    %cst_9 = arith.constant dense<0.000000e+00> : vector<256xf32>
    %18 = vector.multi_reduction <add>, %15, %cst_9 [0] : vector<256x256xf32> to vector<256xf32>
    %19 = vector.shape_cast %18 : vector<256xf32> to vector<1x256xf32>
    %cst_10 = arith.constant dense<0.000000e+00> : vector<4x256xf32>
    %20 = tpu.matmul %1, %10, %cst_10 {dimension_numbers = #tpu.dot_dimension_numbers<[1], [0], [0], [1], [0, 0, 1, 1], [], []>} : vector<4x256xf32>, vector<256x256xf32>, vector<4x256xf32> -> vector<4x256xf32>
    %cst_11 = arith.constant dense<0.000000e+00> : vector<4x256xf32>
    %21 = tpu.matmul %3, %15, %cst_11 {dimension_numbers = #tpu.dot_dimension_numbers<[1], [0], [0], [1], [0, 0, 1, 1], [], []>} : vector<4x256xf32>, vector<256x256xf32>, vector<4x256xf32> -> vector<4x256xf32>
    %22 = tpu.reciprocal %17 {approx = true} : vector<1x256xf32> -> vector<1x256xf32>
    %23 = vector.broadcast %22 : vector<1x256xf32> to vector<4x256xf32>
    %24 = arith.mulf %20, %23 : vector<4x256xf32>
    %25 = tpu.reciprocal %19 {approx = true} : vector<1x256xf32> -> vector<1x256xf32>
    %26 = vector.broadcast %25 : vector<1x256xf32> to vector<4x256xf32>
    %27 = arith.mulf %21, %26 : vector<4x256xf32>
    %cst_12 = arith.constant 0.000000e+00 : f32
    %28 = vector.broadcast %cst_12 : f32 to vector<4x256xf32>
    %29 = arith.subf %28, %27 : vector<4x256xf32>
    %30 = math.exp %29 : vector<4x256xf32>
    %cst_13 = arith.constant 1.000000e+00 : f32
    %31 = vector.broadcast %cst_13 : f32 to vector<4x256xf32>
    %32 = arith.addf %31, %30 : vector<4x256xf32>
    %cst_14 = arith.constant 1.000000e+00 : f32
    %33 = vector.broadcast %cst_14 : f32 to vector<4x256xf32>
    %34 = arith.divf %33, %32 : vector<4x256xf32>
    %cst_15 = arith.constant 0.000000e+00 : f32
    %35 = vector.broadcast %cst_15 : f32 to vector<4x256xf32>
    %36 = arith.subf %35, %24 : vector<4x256xf32>
    %37 = math.exp %36 : vector<4x256xf32>
    %cst_16 = arith.constant 1.000000e+00 : f32
    %38 = vector.broadcast %cst_16 : f32 to vector<4x256xf32>
    %39 = arith.addf %38, %37 : vector<4x256xf32>
    %cst_17 = arith.constant 1.000000e+00 : f32
    %40 = vector.broadcast %cst_17 : f32 to vector<4x256xf32>
    %41 = arith.divf %40, %39 : vector<4x256xf32>
    %42 = arith.mulf %34, %1 : vector<4x256xf32>
    %43 = arith.mulf %41, %3 : vector<4x256xf32>
    %44 = arith.addf %42, %43 : vector<4x256xf32>
    %c0_18 = arith.constant 0 : index
    %c0_19 = arith.constant 0 : index
    %45 = vector.load %arg3[%c0_18, %c0_19] : memref<1x4xf32, #tpu.memory_space<vmem>>, vector<1x4xf32>
    %cst_20 = arith.constant dense<0.000000e+00> : vector<1x256xf32>
    %46 = tpu.matmul %45, %44, %cst_20 {dimension_numbers = #tpu.dot_dimension_numbers<[1], [0], [0], [1], [0, 0, 1, 1], [], []>} : vector<1x4xf32>, vector<4x256xf32>, vector<1x256xf32> -> vector<1x256xf32>
    %c0_21 = arith.constant 0 : index
    %c0_22 = arith.constant 0 : index
    %c0_23 = arith.constant 0 : index
    %47 = vector.load %arg4[%c0_21, %c0_22, %c0_23] : memref<1x1x256xf32, #tpu.memory_space<vmem>>, vector<1x1x256xf32>
    %48 = vector.shape_cast %47 : vector<1x1x256xf32> to vector<1x256xf32>
    %49 = vector.shape_cast %46 : vector<1x256xf32> to vector<1x1x256xf32>
    tpu.vector_store %arg4[%c0_21, %c0_22, %c0_23], %49 {strides = array<i32>} : memref<1x1x256xf32, #tpu.memory_space<vmem>>, vector<1x1x256xf32>,
    return
  }
  func.func @transform_0(%arg0: i32) -> (i32, i32, i32) {
    %c0_i32 = arith.constant 0 : i32
    %c0_i32_0 = arith.constant 0 : i32
    %c0_i32_1 = arith.constant 0 : i32
    return %arg0, %c0_i32, %c0_i32_0 : i32, i32, i32
  }
  func.func @transform_1(%arg0: i32) -> (i32, i32, i32) {
    %c0_i32 = arith.constant 0 : i32
    %c0_i32_0 = arith.constant 0 : i32
    %c0_i32_1 = arith.constant 0 : i32
    return %arg0, %c0_i32, %c0_i32_0 : i32, i32, i32
  }
  func.func @transform_2(%arg0: i32) -> (i32, i32) {
    %c0_i32 = arith.constant 0 : i32
    %c0_i32_0 = arith.constant 0 : i32
    %c0_i32_1 = arith.constant 0 : i32
    return %c0_i32, %c0_i32_0 : i32, i32
  }
  func.func @transform_3(%arg0: i32) -> (i32, i32, i32) {
    %c0_i32 = arith.constant 0 : i32
    %c0_i32_0 = arith.constant 0 : i32
    %c0_i32_1 = arith.constant 0 : i32
    return %arg0, %c0_i32, %c0_i32_0 : i32, i32, i32
  }
}

</mosaic_0001>

<bundles_post_ra>
// kernel: tpu_custom_call.1
= control target key start
LH: loop header
LB: loop body
LE: loop exit
PB: predicated region body
PF: predicated region fallthrough
CT: control target
= control target key end

     0   :  { %8 = vsyncpa [#allocation3], 0  ;;  %s4215_s0 = inlined_call_operand.hbm [shape: f32[2,4,256], index: 0, kind: input, shape index: {}]   ;;  %s4216_s1 = inlined_call_operand.hbm [shape: f32[2,4,256], index: 1, kind: input, shape index: {}]   ;;  %s4217_s2 = inlined_call_operand.vmem [shape: f32[1,4], index: 2, kind: input, shape index: {}]   ;;  %s4218_s3 = inlined_call_operand.hbm [shape: f32[2,1,256], index: 3, kind: output, shape index: {}]  }
   0x1   :  { %10 = vsyncpa [#allocation3 + $0x1], 0 }
   0x2   :  { %11 = vsyncpa [#allocation6], 0 }
   0x3   :  { %13 = vsyncpa [#allocation6 + $0x1], 0 }
   0x4   :  { %14 = vsyncpa [#allocation4], 0 }
   0x5   :  { %16 = vsyncpa [#allocation4 + $0x1], 0  ;;  %s2729_s12 = smov 0   ;;  %s2731_s13 = smov 0  }
   0x6   :  { %s2733_s14 = smov 0   ;;  %s2735_s15 = smov 0  }
   0x7 LB: > { %s2750_s16 = sadd.s32 4294967295, %s2702_s15   ;;  %s2149_s17 = sadd.s32 4294967294, %s2702_s15   ;;  %s2702_s15 = sphi %s2735_s15, %s4646_s15   ;;  %s2698_s14 = sphi %s2733_s14, %s4645_s14   ;;  %s2694_s13 = sphi %s2731_s13, %s4644_s13   ;;  %s2690_s12 = sphi %s2729_s12, %s4643_s12  }
   0x8   : > { %s2754_s18 = sadd.s32 1, %s2702_s15   ;;  %s29_s19 = sadd.s32 1, %s2698_s14 }
   0x9   : > { %s26_s20 = ssub.s32 %s2702_s15, %s2754_s18  ;;  %p36_p0 = scmp.ne.s32.totalorder %s2698_s14, %s2694_s13 }
   0xa   : > { %p27_p1 = scmp.eq.s32.totalorder %s26_s20, 0  ;;  %p37_p2 = scmp.eq.s32.totalorder %s2702_s15, 0 }
   0xb   : > { %p42_p3 = scmp.ne.s32.totalorder %s2694_s13, %s2690_s12  ;;  %p43_p4 = scmp.eq.s32.totalorder %s2750_s16, 0 }
   0xc   : > { %s2766_s21 = scalar_select %p27_p1, %s2698_s14, %s29_s19  }
   0xd   : > { %p2768_p5 = por %p37_p2, %p36_p0  ;;  %p2772_p6 = por %p43_p4, %p42_p3 }
   0xe   : > { %p113_p7 = scmp.eq.s32.totalorder %s2750_s16, 1  ;;  %p119_p8 = scmp.eq.s32.totalorder %s2149_s17, 1 }
   0xf   : > { %s4353_s23 = scalar_select %p2772_p6, 1, 0 }
  0x10   : > { %p2258_p10 = scmp.lt.s32.totalorder %s2702_s15, 2  ;;  %p2779_p11 = por %p113_p7, %p36_p0 }
  0x11   : > { %p2783_p12 = por %p119_p8, %p42_p3  ;;  %s2788_s26 = sand.u32 1, %s2698_s14  }
  0x12   : > { %s4354_s24 = scalar_select %p2779_p11, 1, 0 }
  0x13   : > { %s4355_s25 = scalar_select %p2783_p12, 1, 0 }
  0x14   : > { %s2238_s27 = sshll.u32 %s2702_s15, 7  ;;  %s2152_s28 = sshll.u32 %s2788_s26, 3 }
  0x15   : > { %s2797_s4 = scalar_lea.hbm %s4215_s0, %s2238_s27  ;;  %s146_s5 = scalar_lea.vmem [#allocation2], %s2152_s28 }
  0x16   : > { %s154_s6 = sshll.u32 %s146_s5, 4  ;;  %p2803_p13 = pnand %p2258_p10, %p2768_p5  ;;  %s2807_s6 = int_to_ptr.vmem [resolvable:$true] %s154_s6 }
  0x17   : > { %s143_s8 = scalar_lea.sflag [#allocation3], %s2788_s26  ;;  %s2578_s9 = scalar_lea.hbm %s2797_s4, 128 }
  0x18   : > { %p2579_p2 = scmp.ne.s32.totalorder %s2797_s4, %s2578_s9  ;;  %p2580_p3 = pneg %p2803_p13 }
  0x19   : > { %s2583_s17 = scalar_lea.hbm %s4215_s0, 256  ;;  %p2584_p5 = scmp.lt.s32.totalorder %s2797_s4, %s4215_s0 }
  0x1a   : > { %p2581_p4 = pnand %p2580_p3, %p2579_p2  ;;  %p2585_p8 = scmp.lt.s32.totalorder %s2583_s17, %s2578_s9 }
  0x1c   : > { %p2582_p7 = pneg %p2581_p4  ;;  %p2586_p10 = por %p2585_p8, %p2584_p5 }
  0x1e   : > { %p2587_p9 = pnand %p2586_p10, %p2582_p7 }
  0x20   : > { %2590 = shalt.err (!%p2587_p9)
}
  0x21   : > { %s2591_s22 = scalar_lea.vmem %s2807_s6, 128  ;;  %s2704_s29 = smov [#allocation2]  }
  0x22   : > { %p2592_p0 = scmp.ne.s32.totalorder %s2807_s6, %s2591_s22  ;;  %s2596_s30 = sshll.u32 %s2704_s29, 4  ;;  %s2597_s30 = int_to_ptr.vmem [resolvable:$false] %s2596_s30 }
  0x23   : > { %s2598_s5 = scalar_lea.vmem %s2597_s30, 256  ;;  %p2599_p1 = scmp.lt.s32.totalorder %s2807_s6, %s2597_s30 }
  0x24   : > { %p2594_p2 = pnand %p2592_p0, %p2580_p3  ;;  %p2600_p12 = scmp.lt.s32.totalorder %s2598_s5, %s2591_s22 }
  0x26   : > { %p2595_p4 = pneg %p2594_p2  ;;  %p2601_p11 = por %p2600_p12, %p2599_p1 }
  0x28   : > { %p2602_p5 = pnand %p2601_p11, %p2595_p4 }
  0x2a   : > { %2605 = shalt.err (!%p2602_p5)
}
  0x2b   : > { %2250 = dma.hbm_to_vmem [thread:$0]  (!%p2803_p13), %s2797_s4, 128, %s2807_s6, %s143_s8  }
  0x2c   : > { %p4357_p9 = scmp.lt.s32.totalorder %s2702_s15, 3  ;;  %p4358_p0 = scmp.ge.s32.totalorder %s2702_s15, 1 }
  0x2d   : > { %s2849_s17 = scalar_lea.hbm %s4216_s1, %s2238_s27  ;;  %s165_s19 = scalar_lea.vmem [#allocation5], %s2152_s28 }
  0x2e   : > { %p2840_p7 = pnand %p4358_p0, %p4357_p9  ;;  %s173_s20 = sshll.u32 %s165_s19, 4  ;;  %s174_s20 = int_to_ptr.vmem [resolvable:$true] %s173_s20 }
  0x2f   : > { %s162_s4 = scalar_lea.sflag [#allocation6], %s2788_s26  ;;  %s2606_s6 = scalar_lea.hbm %s2849_s17, 128 }
  0x30   : > { %s4359_s9 = scalar_select %p2840_p7, 1, 0 }
  0x31   : > { %p2607_p11 = scmp.ne.s32.totalorder %s2849_s17, %s2606_s6  ;;  %s2611_s29 = scalar_lea.hbm %s4216_s1, 256 }
  0x32   : > { %p2612_p8 = scmp.lt.s32.totalorder %s2849_s17, %s4216_s1  ;;  %p2613_p10 = scmp.lt.s32.totalorder %s2611_s29, %s2606_s6 }
  0x33   : > { %p2609_p12 = pnand %p2607_p11, %p2580_p3 }
  0x34   : > { %p2614_p2 = por %p2613_p10, %p2612_p8 }
  0x35   : > { %p2610_p1 = pneg %p2609_p12 }
  0x37   : > { %p2615_p4 = pnand %p2614_p2, %p2610_p1 }
  0x39   : > { %2618 = shalt.err (!%p2615_p4)
}
  0x3a   : > { %s2619_s28 = scalar_lea.vmem %s174_s20, 128  ;;  %s2705_s26 = smov [#allocation5]  }
  0x3b   : > { %p2620_p5 = scmp.ne.s32.totalorder %s174_s20, %s2619_s28  ;;  %s2624_s5 = sshll.u32 %s2705_s26, 4  ;;  %s2625_s5 = int_to_ptr.vmem [resolvable:$false] %s2624_s5 }
  0x3c   : > { %s2626_s10 = scalar_lea.vmem %s2625_s5, 256  ;;  %p2627_p11 = scmp.lt.s32.totalorder %s174_s20, %s2625_s5 }
  0x3d   : > { %p2622_p9 = pnand %p2620_p5, %p2580_p3  ;;  %p2628_p12 = scmp.lt.s32.totalorder %s2626_s10, %s2619_s28 }
  0x3f   : > { %p2623_p0 = pneg %p2622_p9  ;;  %p2629_p6 = por %p2628_p12, %p2627_p11 }
  0x41   : > { %p2630_p7 = pnand %p2629_p6, %p2623_p0 }
  0x43   : > { %2633 = shalt.err (!%p2630_p7)
}
  0x44   : > { %2253 = dma.hbm_to_vmem [thread:$0]  (!%p2803_p13), %s2849_s17, 128, %s174_s20, %s162_s4  }
  0x45   : > { %p4360_p1 = scmp.ne.s32.totalorder %s4359_s9, 0 }
  0x47   : > { %182 = sbr.rel (%p4360_p1) target bundleno = 1194 (0x4aa), region = 32 }
  0x4c   : > { %s2875_s11 = sand.u32 1, %s2694_s13   ;;  %p4361_p3 = scmp.ne.s32.totalorder %s4353_s23, 0 }
  0x4d   : > { %s2159_s19 = sshll.u32 %s2875_s11, 3  ;;  %s185_s6 = scalar_lea.sflag [#allocation3], %s2875_s11 }
  0x4e   : > { %s2879_s8 = scalar_lea.vmem [#allocation2], %s2159_s19 }
  0x4f   : > { %2677 = dma.done.wait (%p4361_p3), %s185_s6, 128  }
  0x50   : > { %2679 = vsyncadd (%p4361_p3), %s185_s6, 4294967168  ;;  %s194_s7 = scalar_lea.sflag [#allocation6], %s2875_s11  ;;  %s2886_s9 = scalar_lea.vmem [#allocation5], %s2159_s19 }
  0x51   : > { %2681 = dma.done.wait (%p4361_p3), %s194_s7, 128  }
  0x52   : > { %2683 = vsyncadd (%p4361_p3), %s194_s7, 4294967168  ;;  %v4221_v0 = vmov 0.0   ;;  %v225_v1 = vld [vmem:[%s2879_s8] sm:$0xff]  ;;  %v226_v2 = vld [vmem:[%s2886_s9] sm:$0xff]  ;;  %vm393_vm0 = vcmask 1043456   ;;  %vm296_vm1 = vcmask 31744  }
  0x53   : > { %462 = vmatprep.mubr.f32.mxu0 %v4221_v0  ;;  %884 = vmatprep.mubr.f32.mxu1 %v4221_v0  ;;  %v2896_v3 = vcombine.high %v225_v1, %v225_v1  ;;  %v2898_v4 = vcombine.high %v226_v2, %v226_v2  ;;  %s2161_s20 = sshll.u32 %s2875_s11, 1  ;;  %s2240_s4 = sshll.u32 %s2750_s16, 5 }
  0x54   : > { %230 = vxpose.xlu0.b32.start.end [1/1] (short) %v225_v1, 128  ;;  %s224_s22 = scalar_lea.vmem [#allocation7], %s2161_s20  ;;  %s2054_s28 = scalar_lea.hbm %s4218_s3, %s2240_s4 }
  0x55   : > { %4362 = vst [vmem:[#allocation11_spill] sm:$0xff] %v2896_v3  ;;  %4363 = vst [vmem:[#allocation12_spill] sm:$0xff] %v2898_v4  ;;  %262 = vxpose.xlu1.b32.start.end [1/1] (short) %v2896_v3, 128  ;;  %2162 = vmatprep.subr.msk.mxu0 %vm393_vm0, %v2898_v4  ;;  %s2056_s29 = sshll.u32 %s224_s22, 4  ;;  %s2042_s26 = scalar_lea.sflag [#allocation4], %s2875_s11  ;;  %s2057_s29 = int_to_ptr.vmem [resolvable:$true] %s2056_s29 }
  0x56   : > { %2163 = vmatpush1.msk.msra.mxu0 %vm393_vm0, %v226_v2  ;;  %2196 = vmatprep.subr.msk.mxu1 %vm393_vm0, %v2896_v3  ;;  %s2634_s5 = scalar_lea.vmem %s2057_s29, 32  ;;  %p4640_p13 = scmp.ne.s32.totalorder %s4354_s24, 0 }
  0x57   : > { %2197 = vmatpush1.msk.msra.mxu1 %vm393_vm0, %v225_v1  ;;  %p2635_p6 = scmp.ne.s32.totalorder %s2057_s29, %s2634_s5  ;;  %s2708_s10 = smov [#allocation7]  }
  0x58   : > { %s2638_s19 = sshll.u32 %s2708_s10, 4  ;;  %s2639_s19 = int_to_ptr.vmem [resolvable:$false] %s2638_s19 }
  0x59   : > { %p2636_p7 = pnand %p2635_p6, %p4640_p13  ;;  %s2640_s16 = scalar_lea.vmem %s2639_s19, 64 }
  0x5a   : > { %p2641_p10 = scmp.lt.s32.totalorder %s2057_s29, %s2639_s19  ;;  %p2642_p2 = scmp.lt.s32.totalorder %s2640_s16, %s2634_s5 }
  0x5b   : > { %p2637_p8 = pneg %p2636_p7 }
  0x5c   : > { %p2643_p4 = por %p2642_p2, %p2641_p10 }
  0x5e   : > { %p2644_p5 = pnand %p2643_p4, %p2637_p8 }
  0x91   : > { %656 = vxpose.xlu0.b32.start.end [1/1] (short) %v226_v2, 128 }
  0x92   : > { %688 = vxpose.xlu1.b32.start.end [1/1] (short) %v2898_v4, 128 }
  0xd0   : > { %v246_v5 = vpop.trf.xlu0 }
  0xd1   : > { %2164 = vmatmul.mubr.msk.f32.vlgmr.msra.gmra.mxu0 %vm296_vm1, %v246_v5  ;;  %v278_v6 = vpop.trf.xlu1 }
  0xd2   : > { %468 = vmatprep.mubr.f32.mxu0 %v4221_v0 }
  0xd4   : > { %v247_v7 = vpop.trf.xlu0 }
  0xd5   : > { %2165 = vmatmul.mubr.msk.f32.gmra.mxu0 %vm296_vm1, %v247_v7  ;;  %v279_v8 = vpop.trf.xlu1 }
  0xd6   : > { %474 = vmatprep.mubr.f32.mxu0 %v4221_v0 }
  0xd8   : > { %v248_v9 = vpop.trf.xlu0 }
  0xd9   : > { %2166 = vmatmul.mubr.msk.f32.gmra.mxu0 %vm296_vm1, %v248_v9  ;;  %v280_v11 = vpop.trf.xlu1 }
  0xda   : > { %480 = vmatprep.mubr.f32.mxu0 %v4221_v0 }
  0xdc   : > { %v249_v10 = vpop.trf.xlu0 }
  0xdd   : > { %2167 = vmatmul.mubr.msk.f32.gmra.mxu0 %vm296_vm1, %v249_v10  ;;  %v281_v13 = vpop.trf.xlu1 }
  0xde   : > { %486 = vmatprep.mubr.f32.mxu0 %v4221_v0 }
  0xe0   : > { %v250_v12 = vpop.trf.xlu0 }
  0xe1   : > { %2168 = vmatmul.mubr.msk.f32.gmra.mxu0 %vm296_vm1, %v250_v12  ;;  %v282_v16 = vpop.trf.xlu1 }
  0xe2   : > { %492 = vmatprep.mubr.f32.mxu0 %v4221_v0 }
  0xe4   : > { %v251_v14 = vpop.trf.xlu0 }
  0xe5   : > { %2169 = vmatmul.mubr.msk.f32.gmra.mxu0 %vm296_vm1, %v251_v14  ;;  %v283_v18 = vpop.trf.xlu1 }
  0xe6   : > { %498 = vmatprep.mubr.f32.mxu0 %v4221_v0 }
  0xe8   : > { %v252_v15 = vpop.trf.xlu0 }
  0xe9   : > { %2170 = vmatmul.mubr.msk.f32.gmra.mxu0 %vm296_vm1, %v252_v15  ;;  %v284_v21 = vpop.trf.xlu1 }
  0xea   : > { %504 = vmatprep.mubr.f32.mxu0 %v4221_v0 }
  0xec   : > { %v253_v17 = vpop.trf.xlu0 }
  0xed   : > { %2171 = vmatmul.mubr.msk.f32.gmra.mxu0 %vm296_vm1, %v253_v17  ;;  %v285_v23 = vpop.trf.xlu1 }
  0xee   : > { %510 = vmatprep.mubr.f32.mxu0 %v4221_v0 }
  0xf0   : > { %v254_v19 = vpop.trf.xlu0 }
  0xf1   : > { %2172 = vmatmul.mubr.msk.f32.gmra.mxu0 %vm296_vm1, %v254_v19  ;;  %v286_v26 = vpop.trf.xlu1 }
  0xf2   : > { %516 = vmatprep.mubr.f32.mxu0 %v4221_v0 }
  0xf4   : > { %v255_v20 = vpop.trf.xlu0 }
  0xf5   : > { %2173 = vmatmul.mubr.msk.f32.gmra.mxu0 %vm296_vm1, %v255_v20  ;;  %v287_v28 = vpop.trf.xlu1 }
  0xf6   : > { %522 = vmatprep.mubr.f32.mxu0 %v4221_v0 }
  0xf8   : > { %v256_v22 = vpop.trf.xlu0 }
  0xf9   : > { %2174 = vmatmul.mubr.msk.f32.gmra.mxu0 %vm296_vm1, %v256_v22  ;;  %v288_v31 = vpop.trf.xlu1 }
  0xfa   : > { %528 = vmatprep.mubr.f32.mxu0 %v4221_v0 }
  0xfc   : > { %v257_v24 = vpop.trf.xlu0 }
  0xfd   : > { %2175 = vmatmul.mubr.msk.f32.gmra.mxu0 %vm296_vm1, %v257_v24  ;;  %v289_v33 = vpop.trf.xlu1 }
  0xfe   : > { %534 = vmatprep.mubr.f32.mxu0 %v4221_v0 }
 0x100   : > { %v258_v25 = vpop.trf.xlu0 }
 0x101   : > { %2176 = vmatmul.mubr.msk.f32.gmra.mxu0 %vm296_vm1, %v258_v25  ;;  %v290_v36 = vpop.trf.xlu1 }
 0x102   : > { %540 = vmatprep.mubr.f32.mxu0 %v4221_v0 }
 0x104   : > { %v259_v27 = vpop.trf.xlu0 }
 0x105   : > { %2177 = vmatmul.mubr.msk.f32.gmra.mxu0 %vm296_vm1, %v259_v27  ;;  %v291_v38 = vpop.trf.xlu1 }
 0x106   : > { %546 = vmatprep.mubr.f32.mxu0 %v4221_v0 }
 0x108   : > { %v260_v29 = vpop.trf.xlu0 }
 0x109   : > { %2178 = vmatmul.mubr.msk.f32.gmra.mxu0 %vm296_vm1, %v260_v29  ;;  %v292_v41 = vpop.trf.xlu1 }
 0x10a   : > { %552 = vmatprep.mubr.f32.mxu0 %v4221_v0 }
 0x10c   : > { %v261_v30 = vpop.trf.xlu0 }
 0x10d   : > { %2179 = vmatmul.mubr.msk.f32.gmra.mxu0 %vm296_vm1, %v261_v30  ;;  %v293_v43 = vpop.trf.xlu1 }
 0x10e   : > { %558 = vmatprep.mubr.f32.mxu0 %v4221_v0 }
 0x110   : > { %v672_v32 = vpop.trf.xlu0 }
 0x111   : > { %2180 = vmatmul.mubr.msk.f32.gmra.mxu0 %vm296_vm1, %v278_v6  ;;  %2198 = vmatmul.mubr.msk.f32.vlgmr.msra.gmra.mxu1 %vm296_vm1, %v672_v32  ;;  %v704_v46 = vpop.trf.xlu1 }
 0x112   : > { %564 = vmatprep.mubr.f32.mxu0 %v4221_v0  ;;  %890 = vmatprep.mubr.f32.mxu1 %v4221_v0 }
 0x114   : > { %v673_v34 = vpop.trf.xlu0 }
 0x115   : > { %2181 = vmatmul.mubr.msk.f32.gmra.mxu0 %vm296_vm1, %v279_v8  ;;  %2199 = vmatmul.mubr.msk.f32.gmra.mxu1 %vm296_vm1, %v673_v34  ;;  %v705_v48 = vpop.trf.xlu1 }
 0x116   : > { %570 = vmatprep.mubr.f32.mxu0 %v4221_v0  ;;  %896 = vmatprep.mubr.f32.mxu1 %v4221_v0 }
 0x118   : > { %v674_v35 = vpop.trf.xlu0 }
 0x119   : > { %2182 = vmatmul.mubr.msk.f32.gmra.mxu0 %vm296_vm1, %v280_v11  ;;  %2200 = vmatmul.mubr.msk.f32.gmra.mxu1 %vm296_vm1, %v674_v35  ;;  %v706_v51 = vpop.trf.xlu1 }
 0x11a   : > { %576 = vmatprep.mubr.f32.mxu0 %v4221_v0  ;;  %902 = vmatprep.mubr.f32.mxu1 %v4221_v0 }
 0x11c   : > { %v675_v37 = vpop.trf.xlu0 }
 0x11d   : > { %2183 = vmatmul.mubr.msk.f32.gmra.mxu0 %vm296_vm1, %v281_v13  ;;  %2201 = vmatmul.mubr.msk.f32.gmra.mxu1 %vm296_vm1, %v675_v37  ;;  %v707_v53 = vpop.trf.xlu1 }
 0x11e   : > { %582 = vmatprep.mubr.f32.mxu0 %v4221_v0  ;;  %908 = vmatprep.mubr.f32.mxu1 %v4221_v0 }
 0x120   : > { %v676_v39 = vpop.trf.xlu0 }
 0x121   : > { %2184 = vmatmul.mubr.msk.f32.gmra.mxu0 %vm296_vm1, %v282_v16  ;;  %2202 = vmatmul.mubr.msk.f32.gmra.mxu1 %vm296_vm1, %v676_v39  ;;  %v708_v56 = vpop.trf.xlu1 }
 0x122   : > { %588 = vmatprep.mubr.f32.mxu0 %v4221_v0  ;;  %914 = vmatprep.mubr.f32.mxu1 %v4221_v0 }
 0x124   : > { %v677_v40 = vpop.trf.xlu0 }
 0x125   : > { %2185 = vmatmul.mubr.msk.f32.gmra.mxu0 %vm296_vm1, %v283_v18  ;;  %2203 = vmatmul.mubr.msk.f32.gmra.mxu1 %vm296_vm1, %v677_v40  ;;  %v709_v58 = vpop.trf.xlu1 }
 0x126   : > { %594 = vmatprep.mubr.f32.mxu0 %v4221_v0  ;;  %920 = vmatprep.mubr.f32.mxu1 %v4221_v0 }
 0x128   : > { %v678_v42 = vpop.trf.xlu0 }
 0x129   : > { %2186 = vmatmul.mubr.msk.f32.gmra.mxu0 %vm296_vm1, %v284_v21  ;;  %2204 = vmatmul.mubr.msk.f32.gmra.mxu1 %vm296_vm1, %v678_v42  ;;  %v710_v59 = vpop.trf.xlu1 }
 0x12a   : > { %600 = vmatprep.mubr.f32.mxu0 %v4221_v0  ;;  %926 = vmatprep.mubr.f32.mxu1 %v4221_v0 }
 0x12c   : > { %v679_v44 = vpop.trf.xlu0 }
 0x12d   : > { %2187 = vmatmul.mubr.msk.f32.gmra.mxu0 %vm296_vm1, %v285_v23  ;;  %2205 = vmatmul.mubr.msk.f32.gmra.mxu1 %vm296_vm1, %v679_v44  ;;  %v711_v60 = vpop.trf.xlu1 }
 0x12e   : > { %606 = vmatprep.mubr.f32.mxu0 %v4221_v0  ;;  %932 = vmatprep.mubr.f32.mxu1 %v4221_v0 }
 0x130   : > { %v680_v45 = vpop.trf.xlu0 }
 0x131   : > { %2188 = vmatmul.mubr.msk.f32.gmra.mxu0 %vm296_vm1, %v286_v26  ;;  %2206 = vmatmul.mubr.msk.f32.gmra.mxu1 %vm296_vm1, %v680_v45  ;;  %v712_v61 = vpop.trf.xlu1 }
 0x132   : > { %612 = vmatprep.mubr.f32.mxu0 %v4221_v0  ;;  %938 = vmatprep.mubr.f32.mxu1 %v4221_v0 }
 0x134   : > { %v681_v47 = vpop.trf.xlu0 }
 0x135   : > { %2189 = vmatmul.mubr.msk.f32.gmra.mxu0 %vm296_vm1, %v287_v28  ;;  %2207 = vmatmul.mubr.msk.f32.gmra.mxu1 %vm296_vm1, %v681_v47  ;;  %v713_v62 = vpop.trf.xlu1 }
 0x136   : > { %618 = vmatprep.mubr.f32.mxu0 %v4221_v0  ;;  %944 = vmatprep.mubr.f32.mxu1 %v4221_v0 }
 0x138   : > { %v682_v49 = vpop.trf.xlu0 }
 0x139   : > { %2190 = vmatmul.mubr.msk.f32.gmra.mxu0 %vm296_vm1, %v288_v31  ;;  %2208 = vmatmul.mubr.msk.f32.gmra.mxu1 %vm296_vm1, %v682_v49  ;;  %v714_v63 = vpop.trf.xlu1 }
 0x13a   : > { %624 = vmatprep.mubr.f32.mxu0 %v4221_v0  ;;  %950 = vmatprep.mubr.f32.mxu1 %v4221_v0 }
 0x13c   : > { %v683_v50 = vpop.trf.xlu0 }
 0x13d   : > { %2191 = vmatmul.mubr.msk.f32.gmra.mxu0 %vm296_vm1, %v289_v33  ;;  %2209 = vmatmul.mubr.msk.f32.gmra.mxu1 %vm296_vm1, %v683_v50  ;;  %v715_v1 = vpop.trf.xlu1 }
 0x13e   : > { %630 = vmatprep.mubr.f32.mxu0 %v4221_v0  ;;  %956 = vmatprep.mubr.f32.mxu1 %v4221_v0 }
 0x140   : > { %v684_v52 = vpop.trf.xlu0 }
 0x141   : > { %2192 = vmatmul.mubr.msk.f32.gmra.mxu0 %vm296_vm1, %v290_v36  ;;  %2210 = vmatmul.mubr.msk.f32.gmra.mxu1 %vm296_vm1, %v684_v52  ;;  %v716_v2 = vpop.trf.xlu1 }
 0x142   : > { %636 = vmatprep.mubr.f32.mxu0 %v4221_v0  ;;  %962 = vmatprep.mubr.f32.mxu1 %v4221_v0 }
 0x144   : > { %v685_v54 = vpop.trf.xlu0 }
 0x145   : > { %2193 = vmatmul.mubr.msk.f32.gmra.mxu0 %vm296_vm1, %v291_v38  ;;  %2211 = vmatmul.mubr.msk.f32.gmra.mxu1 %vm296_vm1, %v685_v54  ;;  %v717_v5 = vpop.trf.xlu1 }
 0x146   : > { %642 = vmatprep.mubr.f32.mxu0 %v4221_v0  ;;  %968 = vmatprep.mubr.f32.mxu1 %v4221_v0 }
 0x148   : > { %v686_v55 = vpop.trf.xlu0 }
 0x149   : > { %2194 = vmatmul.mubr.msk.f32.gmra.mxu0 %vm296_vm1, %v292_v41  ;;  %2212 = vmatmul.mubr.msk.f32.gmra.mxu1 %vm296_vm1, %v686_v55  ;;  %v718_v6 = vpop.trf.xlu1 }
 0x14a   : > { %648 = vmatprep.mubr.f32.mxu0 %v4221_v0  ;;  %974 = vmatprep.mubr.f32.mxu1 %v4221_v0 }
 0x14c   : > { %v687_v57 = vpop.trf.xlu0 }
 0x14d   : > { %2195 = vmatmul.mubr.msk.f32.gmra.mxu0 %vm296_vm1, %v293_v43  ;;  %2213 = vmatmul.mubr.msk.f32.gmra.mxu1 %vm296_vm1, %v687_v57  ;;  %v719_v7 = vpop.trf.xlu1 }
 0x14e   : > { %980 = vmatprep.mubr.f32.mxu1 %v4221_v0  ;;  %1821 = vmatprep.mubr.f32.mxu0 %v2896_v3 }
 0x151   : > { %2214 = vmatmul.mubr.msk.f32.gmra.mxu1 %vm296_vm1, %v704_v46 }
 0x152   : > { %986 = vmatprep.mubr.f32.mxu1 %v4221_v0 }
 0x155   : > { %2215 = vmatmul.mubr.msk.f32.gmra.mxu1 %vm296_vm1, %v705_v48 }
 0x156   : > { %992 = vmatprep.mubr.f32.mxu1 %v4221_v0 }
 0x159   : > { %2216 = vmatmul.mubr.msk.f32.gmra.mxu1 %vm296_vm1, %v706_v51 }
 0x15a   : > { %998 = vmatprep.mubr.f32.mxu1 %v4221_v0 }
 0x15d   : > { %2217 = vmatmul.mubr.msk.f32.gmra.mxu1 %vm296_vm1, %v707_v53 }
 0x15e   : > { %1004 = vmatprep.mubr.f32.mxu1 %v4221_v0 }
 0x161   : > { %2218 = vmatmul.mubr.msk.f32.gmra.mxu1 %vm296_vm1, %v708_v56 }
 0x162   : > { %1010 = vmatprep.mubr.f32.mxu1 %v4221_v0 }
 0x165   : > { %2219 = vmatmul.mubr.msk.f32.gmra.mxu1 %vm296_vm1, %v709_v58 }
 0x166   : > { %1016 = vmatprep.mubr.f32.mxu1 %v4221_v0 }
 0x169   : > { %2220 = vmatmul.mubr.msk.f32.gmra.mxu1 %vm296_vm1, %v710_v59 }
 0x16a   : > { %1022 = vmatprep.mubr.f32.mxu1 %v4221_v0 }
 0x16d   : > { %2221 = vmatmul.mubr.msk.f32.gmra.mxu1 %vm296_vm1, %v711_v60 }
 0x16e   : > { %1028 = vmatprep.mubr.f32.mxu1 %v4221_v0 }
 0x171   : > { %2222 = vmatmul.mubr.msk.f32.gmra.mxu1 %vm296_vm1, %v712_v61 }
 0x172   : > { %1034 = vmatprep.mubr.f32.mxu1 %v4221_v0 }
 0x175   : > { %2223 = vmatmul.mubr.msk.f32.gmra.mxu1 %vm296_vm1, %v713_v62 }
 0x176   : > { %1040 = vmatprep.mubr.f32.mxu1 %v4221_v0 }
 0x179   : > { %2224 = vmatmul.mubr.msk.f32.gmra.mxu1 %vm296_vm1, %v714_v63 }
 0x17a   : > { %1046 = vmatprep.mubr.f32.mxu1 %v4221_v0 }
 0x17d   : > { %2225 = vmatmul.mubr.msk.f32.gmra.mxu1 %vm296_vm1, %v715_v1 }
 0x17e   : > { %1052 = vmatprep.mubr.f32.mxu1 %v4221_v0 }
 0x181   : > { %2226 = vmatmul.mubr.msk.f32.gmra.mxu1 %vm296_vm1, %v716_v2 }
 0x182   : > { %1058 = vmatprep.mubr.f32.mxu1 %v4221_v0 }
 0x185   : > { %2227 = vmatmul.mubr.msk.f32.gmra.mxu1 %vm296_vm1, %v717_v5 }
 0x186   : > { %1064 = vmatprep.mubr.f32.mxu1 %v4221_v0 }
 0x189   : > { %2228 = vmatmul.mubr.msk.f32.gmra.mxu1 %vm296_vm1, %v718_v6 }
 0x18a   : > { %1070 = vmatprep.mubr.f32.mxu1 %v4221_v0 }
 0x18d   : > { %2229 = vmatmul.mubr.msk.f32.gmra.mxu1 %vm296_vm1, %v719_v7 }
 0x18e   : > { %1892 = vmatprep.mubr.f32.mxu1 %v2898_v4 }
 0x191   : > { %v3036_v8 = vpop.f32.mrf.mxu0 }
 0x193   : > { %v3038_v9 = vpop.f32.mrf.mxu0 }
 0x194   : > { %4364 = vst [vmem:[#allocation13_spill] sm:$0xff] %v3038_v9 }
 0x195   : > { %v3040_v10 = vpop.f32.mrf.mxu0 }
 0x197   : > { %v3042_v11 = vpop.f32.mrf.mxu0 }
 0x198   : > { %4365 = vst [vmem:[#allocation14_spill] sm:$0xff] %v3042_v11 }
 0x199   : > { %v3044_v12 = vpop.f32.mrf.mxu0 }
 0x19b   : > { %v3046_v13 = vpop.f32.mrf.mxu0 }
 0x19c   : > { %4366 = vst [vmem:[#allocation15_spill] sm:$0xff] %v3046_v13 }
 0x19d   : > { %v3048_v14 = vpop.f32.mrf.mxu0 }
 0x19e   : > { %4367 = vst [vmem:[#allocation16_spill] sm:$0xff] %v3048_v14 }
 0x19f   : > { %v3050_v15 = vpop.f32.mrf.mxu0 }
 0x1a0   : > { %4368 = vst [vmem:[#allocation17_spill] sm:$0xff] %v3050_v15 }
 0x1a1   : > { %v3052_v16 = vpop.f32.mrf.mxu0 }
 0x1a3   : > { %v3054_v17 = vpop.f32.mrf.mxu0 }
 0x1a4   : > { %4369 = vst [vmem:[#allocation18_spill] sm:$0xff] %v3054_v17 }
 0x1a5   : > { %v3056_v18 = vpop.f32.mrf.mxu0 }
 0x1a6   : > { %4370 = vst [vmem:[#allocation19_spill] sm:$0xff] %v3056_v18 }
 0x1a7   : > { %v3058_v19 = vpop.f32.mrf.mxu0 }
 0x1a8   : > { %4371 = vst [vmem:[#allocation20_spill] sm:$0xff] %v3058_v19 }
 0x1a9   : > { %v3060_v20 = vpop.f32.mrf.mxu0 }
 0x1ab   : > { %v3062_v21 = vpop.f32.mrf.mxu0 }
 0x1ac   : > { %4372 = vst [vmem:[#allocation21_spill] sm:$0xff] %v3062_v21 }
 0x1ad   : > { %v3064_v22 = vpop.f32.mrf.mxu0 }
 0x1ae   : > { %4373 = vst [vmem:[#allocation22_spill] sm:$0xff] %v3064_v22 }
 0x1af   : > { %v3066_v23 = vpop.f32.mrf.mxu0 }
 0x1b0   : > { %4374 = vst [vmem:[#allocation23_spill] sm:$0xff] %v3066_v23 }
 0x1b1   : > { %v3068_v24 = vpop.f32.mrf.mxu0 }
 0x1b2   : > { %4375 = vst [vmem:[#allocation24_spill] sm:$0xff] %v3068_v24 }
 0x1b3   : > { %v3070_v25 = vpop.f32.mrf.mxu0 }
 0x1b4   : > { %4376 = vst [vmem:[#allocation25_spill] sm:$0xff] %v3070_v25 }
 0x1b5   : > { %v3072_v26 = vpop.f32.mrf.mxu0 }
 0x1b6   : > { %4377 = vst [vmem:[#allocation26_spill] sm:$0xff] %v3072_v26 }
 0x1b7   : > { %v3074_v27 = vpop.f32.mrf.mxu0 }
 0x1b8   : > { %4378 = vst [vmem:[#allocation27_spill] sm:$0xff] %v3074_v27 }
 0x1b9   : > { %v3076_v28 = vpop.f32.mrf.mxu0 }
 0x1bb   : > { %v3078_v29 = vpop.f32.mrf.mxu0 }
 0x1bc   : > { %4379 = vst [vmem:[#allocation28_spill] sm:$0xff] %v3078_v29 }
 0x1bd   : > { %v3080_v30 = vpop.f32.mrf.mxu0 }
 0x1be   : > { %4380 = vst [vmem:[#allocation29_spill] sm:$0xff] %v3080_v30 }
 0x1bf   : > { %v3082_v31 = vpop.f32.mrf.mxu0 }
 0x1c0   : > { %4381 = vst [vmem:[#allocation30_spill] sm:$0xff] %v3082_v31 }
 0x1c1   : > { %v3084_v32 = vpop.f32.mrf.mxu0 }
 0x1c2   : > { %4382 = vst [vmem:[#allocation31_spill] sm:$0xff] %v3084_v32 }
 0x1c3   : > { %v3086_v33 = vpop.f32.mrf.mxu0 }
 0x1c4   : > { %4383 = vst [vmem:[#allocation32_spill] sm:$0xff] %v3086_v33 }
 0x1c5   : > { %v3088_v34 = vpop.f32.mrf.mxu0 }
 0x1c6   : > { %4384 = vst [vmem:[#allocation33_spill] sm:$0xff] %v3088_v34 }
 0x1c7   : > { %v3090_v35 = vpop.f32.mrf.mxu0 }
 0x1c8   : > { %4385 = vst [vmem:[#allocation34_spill] sm:$0xff] %v3090_v35 }
 0x1c9   : > { %v3092_v36 = vpop.f32.mrf.mxu0 }
 0x1ca   : > { %4386 = vst [vmem:[#allocation35_spill] sm:$0xff] %v3092_v36 }
 0x1cb   : > { %v3094_v37 = vpop.f32.mrf.mxu0 }
 0x1cc   : > { %4387 = vst [vmem:[#allocation36_spill] sm:$0xff] %v3094_v37 }
 0x1cd   : > { %v3096_v38 = vpop.f32.mrf.mxu0 }
 0x1ce   : > { %4388 = vst [vmem:[#allocation37_spill] sm:$0xff] %v3096_v38 }
 0x1cf   : > { %v3098_v39 = vpop.f32.mrf.mxu0 }
 0x1d0   : > { %4389 = vst [vmem:[#allocation38_spill] sm:$0xff] %v3098_v39 }
 0x1d1   : > { %v3100_v40 = vpop.f32.mrf.mxu0  ;;  %v3102_v41 = vpop.f32.mrf.mxu1 }
 0x1d2   : > { %4390 = vst [vmem:[#allocation39_spill] sm:$0xff] %v3102_v41 }
 0x1d3   : > { %v3104_v42 = vpop.f32.mrf.mxu0  ;;  %v3106_v43 = vpop.f32.mrf.mxu1 }
 0x1d4   : > { %4391 = vst [vmem:[#allocation40_spill] sm:$0xff] %v3104_v42  ;;  %4392 = vst [vmem:[#allocation41_spill] sm:$0xff] %v3106_v43 }
 0x1d5   : > { %v3108_v44 = vpop.f32.mrf.mxu0  ;;  %v3110_v45 = vpop.f32.mrf.mxu1 }
 0x1d6   : > { %4393 = vst [vmem:[#allocation42_spill] sm:$0xff] %v3108_v44  ;;  %4394 = vst [vmem:[#allocation43_spill] sm:$0xff] %v3110_v45 }
 0x1d7   : > { %v3112_v46 = vpop.f32.mrf.mxu0  ;;  %v3114_v47 = vpop.f32.mrf.mxu1 }
 0x1d8   : > { %4395 = vst [vmem:[#allocation44_spill] sm:$0xff] %v3112_v46  ;;  %4396 = vst [vmem:[#allocation45_spill] sm:$0xff] %v3114_v47 }
 0x1d9   : > { %v3116_v48 = vpop.f32.mrf.mxu0  ;;  %v3118_v49 = vpop.f32.mrf.mxu1 }
 0x1da   : > { %4397 = vst [vmem:[#allocation46_spill] sm:$0xff] %v3118_v49 }
 0x1db   : > { %v3120_v50 = vpop.f32.mrf.mxu0  ;;  %v3122_v51 = vpop.f32.mrf.mxu1 }
 0x1dc   : > { %4398 = vst [vmem:[#allocation47_spill] sm:$0xff] %v3120_v50  ;;  %4399 = vst [vmem:[#allocation48_spill] sm:$0xff] %v3122_v51 }
 0x1dd   : > { %v3124_v52 = vpop.f32.mrf.mxu0  ;;  %v3126_v53 = vpop.f32.mrf.mxu1 }
 0x1de   : > { %4400 = vst [vmem:[#allocation49_spill] sm:$0xff] %v3124_v52  ;;  %4401 = vst [vmem:[#allocation50_spill] sm:$0xff] %v3126_v53 }
 0x1df   : > { %v3128_v54 = vpop.f32.mrf.mxu0  ;;  %v3130_v55 = vpop.f32.mrf.mxu1 }
 0x1e0   : > { %4402 = vst [vmem:[#allocation51_spill] sm:$0xff] %v3128_v54  ;;  %4403 = vst [vmem:[#allocation52_spill] sm:$0xff] %v3130_v55 }
 0x1e1   : > { %v3132_v56 = vpop.f32.mrf.mxu0  ;;  %v3134_v57 = vpop.f32.mrf.mxu1 }
 0x1e2   : > { %4404 = vst [vmem:[#allocation53_spill] sm:$0xff] %v3134_v57 }
 0x1e3   : > { %v3136_v58 = vpop.f32.mrf.mxu0  ;;  %v3138_v59 = vpop.f32.mrf.mxu1 }
 0x1e4   : > { %4405 = vst [vmem:[#allocation54_spill] sm:$0xff] %v3136_v58  ;;  %4406 = vst [vmem:[#allocation55_spill] sm:$0xff] %v3138_v59 }
 0x1e5   : > { %v3140_v60 = vpop.f32.mrf.mxu0  ;;  %v3142_v61 = vpop.f32.mrf.mxu1 }
 0x1e6   : > { %4407 = vst [vmem:[#allocation56_spill] sm:$0xff] %v3142_v61 }
 0x1e7   : > { %v3144_v62 = vpop.f32.mrf.mxu0  ;;  %v3146_v63 = vpop.f32.mrf.mxu1 }
 0x1e8   : > { %4408 = vst [vmem:[#allocation57_spill] sm:$0xff] %v3144_v62  ;;  %4409 = vst [vmem:[#allocation58_spill] sm:$0xff] %v3146_v63  ;;  %v1077_v63 = vmax.f32 %v3036_v8, %v3044_v12 }
 0x1e9   : > { %v3148_v1 = vpop.f32.mrf.mxu0  ;;  %v3150_v2 = vpop.f32.mrf.mxu1 }
 0x1ea   : > { %4410 = vst [vmem:[#allocation59_spill] sm:$0xff] %v3150_v2  ;;  %v1078_v2 = vmax.f32 %v3040_v10, %v3048_v14 }
 0x1eb   : > { %v3152_v5 = vpop.f32.mrf.mxu0  ;;  %v3154_v6 = vpop.f32.mrf.mxu1 }
 0x1ec   : > { %4411 = vst [vmem:[#allocation60_spill] sm:$0xff] %v3152_v5  ;;  %4412 = vst [vmem:[#allocation61_spill] sm:$0xff] %v3154_v6  ;;  %v1080_v47 = vmax.f32 %v1078_v2, %v3056_v18 }
 0x1ed   : > { %v3156_v7 = vpop.f32.mrf.mxu0  ;;  %v3158_v0 = vpop.f32.mrf.mxu1 }
 0x1ee   : > { %4413 = vst [vmem:[#allocation62_spill] sm:$0xff] %v3158_v0  ;;  %v1079_v0 = vmax.f32 %v1077_v63, %v3052_v16  ;;  %v1082_v45 = vmax.f32 %v1080_v47, %v3064_v22 }
 0x1ef   : > { %v3160_v4 = vpop.f32.mrf.mxu0  ;;  %v3162_v3 = vpop.f32.mrf.mxu1 }
 0x1f0   : > { %4414 = vst [vmem:[#allocation63_spill] sm:$0xff] %v3160_v4  ;;  %4415 = vst [vmem:[#allocation64_spill] sm:$0xff] %v3162_v3 }
 0x1f1   : > { %v3164_v61 = vpop.f32.mrf.mxu0  ;;  %v3166_v59 = vpop.f32.mrf.mxu1 }
 0x1f2   : > { %4416 = vst [vmem:[#allocation65_spill] sm:$0xff] %v3166_v59  ;;  %v1081_v59 = vmax.f32 %v1079_v0, %v3060_v20 }
 0x1f3   : > { %v3172_v57 = vpop.f32.mrf.mxu0  ;;  %v3174_v6 = vpop.f32.mrf.mxu1 }
 0x1f4   : > { %4417 = vst [vmem:[#allocation66_spill] sm:$0xff] %v3172_v57  ;;  %4418 = vst [vmem:[#allocation67_spill] sm:$0xff] %v3174_v6  ;;  %v1083_v14 = vmax.f32 %v1081_v59, %v3068_v24  ;;  %v1084_v6 = vmax.f32 %v1082_v45, %v3072_v26 }
 0x1f5   : > { %v3178_v55 = vpop.f32.mrf.mxu0  ;;  %v3180_v3 = vpop.f32.mrf.mxu1 }
 0x1f6   : > { %4419 = vst [vmem:[#allocation68_spill] sm:$0xff] %v3180_v3  ;;  %v1085_v2 = vmax.f32 %v1083_v14, %v3076_v28  ;;  %v1086_v3 = vmax.f32 %v1084_v6, %v3080_v30 }
 0x1f7   : > { %v3184_v53 = vpop.f32.mrf.mxu0  ;;  %v3186_v43 = vpop.f32.mrf.mxu1 }
 0x1f8   : > { %4420 = vst [vmem:[#allocation69_spill] sm:$0xff] %v3184_v53  ;;  %4421 = vst [vmem:[#allocation70_spill] sm:$0xff] %v3186_v43  ;;  %v1087_v47 = vmax.f32 %v1085_v2, %v3084_v32  ;;  %v1088_v22 = vmax.f32 %v1086_v3, %v3088_v34  ;;  %v1115_v2 = vmax.f32 %v3042_v11, %v3050_v15 }
 0x1f9   : > { %v3190_v51 = vpop.f32.mrf.mxu0  ;;  %v3192_v63 = vpop.f32.mrf.mxu1 }
 0x1fa   : > { %4422 = vst [vmem:[#allocation71_spill] sm:$0xff] %v3192_v63  ;;  %v1089_v45 = vmax.f32 %v1087_v47, %v3092_v36  ;;  %v1090_v26 = vmax.f32 %v1088_v22, %v3096_v38  ;;  %v1114_v22 = vmax.f32 %v3038_v9, %v3046_v13  ;;  %v1117_v38 = vmax.f32 %v1115_v2, %v3058_v19 }
 0x1fb   : > { %v3196_v18 = vpop.f32.mrf.mxu0  ;;  %v3198_v0 = vpop.f32.mrf.mxu1 }
 0x1fc   : > { %4423 = vst [vmem:[#allocation72_spill] sm:$0xff] %v3196_v18  ;;  %4424 = vst [vmem:[#allocation73_spill] sm:$0xff] %v3198_v0  ;;  %v1091_v6 = vmax.f32 %v1089_v45, %v3100_v40  ;;  %v1092_v30 = vmax.f32 %v1090_v26, %v3108_v44  ;;  %v1116_v11 = vmax.f32 %v1114_v22, %v3054_v17 }
 0x1fd   : > { %v3202_v43 = vpop.f32.mrf.mxu0  ;;  %v3204_v59 = vpop.f32.mrf.mxu1  ;;  %v1119_v44 = vmax.f32 %v1117_v38, %v3066_v23 }
 0x1fe   : > { %4425 = vst [vmem:[#allocation74_spill] sm:$0xff] %v3204_v59  ;;  %v1093_v32 = vmax.f32 %v1091_v6, %v3116_v48  ;;  %v1094_v47 = vmax.f32 %v1092_v30, %v3124_v52  ;;  %v1118_v19 = vmax.f32 %v1116_v11, %v3062_v21 }
 0x1ff   : > { %v3208_v24 = vpop.f32.mrf.mxu0  ;;  %v3210_v14 = vpop.f32.mrf.mxu1  ;;  %v1121_v9 = vmax.f32 %v1119_v44, %v3074_v27 }
 0x200   : > { %4426 = vst [vmem:[#allocation75_spill] sm:$0xff] %v3208_v24  ;;  %4427 = vst [vmem:[#allocation76_spill] sm:$0xff] %v3210_v14  ;;  %v1095_v26 = vmax.f32 %v1093_v32, %v3132_v56  ;;  %v1096_v15 = vmax.f32 %v1094_v47, %v3140_v60  ;;  %v1120_v22 = vmax.f32 %v1118_v19, %v3070_v25 }
 0x201   : > { %v3216_v3 = vpop.f32.mrf.mxu0  ;;  %v3218_v34 = vpop.f32.mrf.mxu1  ;;  %v1123_v23 = vmax.f32 %v1121_v9, %v3082_v31 }
 0x202   : > { %4428 = vst [vmem:[#allocation77_spill] sm:$0xff] %v3218_v34  ;;  %v1097_v13 = vmax.f32 %v1095_v26, %v3148_v1  ;;  %v1098_v2 = vmax.f32 %v1096_v15, %v3156_v7  ;;  %v1122_v44 = vmax.f32 %v1120_v22, %v3078_v29 }
 0x203   : > { %v3225_v36 = vpop.f32.mrf.mxu0  ;;  %v3227_v45 = vpop.f32.mrf.mxu1  ;;  %v1125_v27 = vmax.f32 %v1123_v23, %v3090_v35 }
 0x204   : > { %4429 = vst [vmem:[#allocation78_spill] sm:$0xff] %v3225_v36  ;;  %4430 = vst [vmem:[#allocation79_spill] sm:$0xff] %v3227_v45  ;;  %v1099_v47 = vmax.f32 %v1097_v13, %v3164_v61  ;;  %v1100_v38 = vmax.f32 %v1098_v2, %v3178_v55  ;;  %v1124_v2 = vmax.f32 %v1122_v44, %v3086_v33 }
 0x205   : > { %v3233_v6 = vpop.f32.mrf.mxu0  ;;  %v3235_v30 = vpop.f32.mrf.mxu1  ;;  %v1127_v31 = vmax.f32 %v1125_v27, %v3098_v39 }
 0x206   : > { %4431 = vst [vmem:[#allocation80_spill] sm:$0xff] %v3235_v30  ;;  %v1101_v11 = vmax.f32 %v1099_v47, %v3190_v51  ;;  %v1102_v15 = vmax.f32 %v1100_v38, %v3202_v43  ;;  %v1126_v22 = vmax.f32 %v1124_v2, %v3094_v37  ;;  %v4463_v37 = vld [vmem:[#allocation59_spill] sm:$0xff] }
 0x207   : > { %v3241_v52 = vpop.f32.mrf.mxu0  ;;  %v3243_v32 = vpop.f32.mrf.mxu1  ;;  %v1129_v35 = vmax.f32 %v1127_v31, %v3112_v46 }
 0x208   : > { %4432 = vst [vmem:[#allocation81_spill] sm:$0xff] %v3241_v52  ;;  %4433 = vst [vmem:[#allocation82_spill] sm:$0xff] %v3243_v32  ;;  %v1103_v19 = vmax.f32 %v1101_v11, %v3216_v3  ;;  %v1104_v9 = vmax.f32 %v1102_v15, %v3233_v6  ;;  %v1128_v15 = vmax.f32 %v1126_v22, %v3104_v42 }
 0x209   : > { %v3249_v17 = vpop.f32.mrf.mxu0  ;;  %v3251_v26 = vpop.f32.mrf.mxu1  ;;  %v1131_v44 = vmax.f32 %v1129_v35, %v3128_v54 }
 0x20a   : > { %4434 = vst [vmem:[#allocation83_spill] sm:$0xff] %v3249_v17  ;;  %4435 = vst [vmem:[#allocation84_spill] sm:$0xff] %v3251_v26  ;;  %v1105_v38 = vmax.f32 %v1103_v19, %v3249_v17  ;;  %v1130_v39 = vmax.f32 %v1128_v15, %v3120_v50  ;;  %v4462_v50 = vld [vmem:[#allocation58_spill] sm:$0xff] }
 0x20b   : > { %v3257_v21 = vpop.f32.mrf.mxu0  ;;  %v3259_v13 = vpop.f32.mrf.mxu1  ;;  %v1133_v19 = vmax.f32 %v1131_v44, %v3144_v62 }
 0x20c   : > { %4436 = vst [vmem:[#allocation85_spill] sm:$0xff] %v3257_v21  ;;  %4437 = vst [vmem:[#allocation86_spill] sm:$0xff] %v3259_v13  ;;  %v1132_v2 = vmax.f32 %v1130_v39, %v3136_v58 }
 0x20d   : > { %v3265_v25 = vpop.f32.mrf.mxu0  ;;  %v3267_v47 = vpop.f32.mrf.mxu1  ;;  %v1135_v31 = vmax.f32 %v1133_v19, %v3160_v4 }
 0x20e   : > { %4438 = vst [vmem:[#allocation87_spill] sm:$0xff] %v3267_v47  ;;  %v1106_v23 = vmax.f32 %v1104_v9, %v3265_v25 }
 0x20f   : > { %v3273_v29 = vpop.f32.mrf.mxu1  ;;  %v1137_v35 = vmax.f32 %v1135_v31, %v3184_v53  ;;  %v3295_v39 = vpop.f32.mrf.mxu0 }
 0x210   : > { %4439 = vst [vmem:[#allocation88_spill] sm:$0xff] %v3273_v29  ;;  %v1107_v11 = vmax.f32 %v1105_v38, %v1106_v23  ;;  %v1134_v23 = vmax.f32 %v1132_v2, %v3152_v5  ;;  %4445 = vst [vmem:[#allocation94_spill] sm:$0xff] %v3295_v39 }
 0x211   : > { %v3277_v27 = vpop.f32.mrf.mxu1  ;;  %v1139_v44 = vmax.f32 %v1137_v35, %v3208_v24 }
 0x212   : > { %4440 = vst [vmem:[#allocation89_spill] sm:$0xff] %v3277_v27  ;;  %v1108_v33 = vrot.slane %v1107_v11, 4  ;;  %v1136_v15 = vmax.f32 %v1134_v23, %v3172_v57  ;;  %v4458_v57 = vld [vmem:[#allocation53_spill] sm:$0xff] }
 0x213   : > { %v3281_v17 = vpop.f32.mrf.mxu1  ;;  %v1141_v19 = vmax.f32 %v1139_v44, %v3241_v52 }
 0x214   : > { %4441 = vst [vmem:[#allocation90_spill] sm:$0xff] %v3281_v17  ;;  %v1109_v9 = vmax.f32 %v1107_v11, %v1108_v33  ;;  %v1138_v11 = vmax.f32 %v1136_v15, %v3196_v18 }
 0x215   : > { %v3285_v46 = vpop.f32.mrf.mxu1  ;;  %v1143_v31 = vmax.f32 %v1141_v19, %v3295_v39 }
 0x216   : > { %4442 = vst [vmem:[#allocation91_spill] sm:$0xff] %v3285_v46  ;;  %v1110_v38 = vrot.slane %v1109_v9, 2  ;;  %v1140_v2 = vmax.f32 %v1138_v11, %v3225_v36 }
 0x217   : > { %v3289_v22 = vpop.f32.mrf.mxu1 }
 0x218   : > { %4443 = vst [vmem:[#allocation92_spill] sm:$0xff] %v3289_v22  ;;  %v1111_v54 = vmax.f32 %v1109_v9, %v1110_v38  ;;  %v1142_v23 = vmax.f32 %v1140_v2, %v3257_v21  ;;  %v4451_v2 = vld [vmem:[#allocation41_spill] sm:$0xff]  ;;  %v4454_v21 = vld [vmem:[#allocation16_spill] sm:$0xff] }
 0x219   : > { %v3293_v62 = vpop.f32.mrf.mxu1 }
 0x21a   : > { %4444 = vst [vmem:[#allocation93_spill] sm:$0xff] %v3293_v62  ;;  %v1112_v33 = vrot.slane %v1111_v54, 1  ;;  %v1144_v24 = vmax.f32 %v1142_v23, %v1143_v31  ;;  %v4452_v31 = vld [vmem:[#allocation50_spill] sm:$0xff]  ;;  %v4453_v23 = vld [vmem:[#allocation43_spill] sm:$0xff] }
 0x21b   : > { %v3299_v4 = vpop.f32.mrf.mxu1  ;;  %v1344_v39 = vmax.f32 %v4453_v23, %v4452_v31  ;;  %v4461_v23 = vld [vmem:[#allocation56_spill] sm:$0xff] }
 0x21c   : > { %v3305_v38 = vmax.f32 %v1111_v54, %v1112_v33  ;;  %v1343_v54 = vmax.f32 %v3102_v41, %v3118_v49  ;;  %v4450_v33 = vld [vmem:[#allocation48_spill] sm:$0xff]  ;;  %v1145_v52 = vrot.slane %v1144_v24, 4  ;;  %v4459_v49 = vld [vmem:[#allocation55_spill] sm:$0xff] }
 0x21d   : > { %v3303_v9 = vpop.f32.mrf.mxu1  ;;  %v1380_v36 = vmax.f32 %v4451_v2, %v4450_v33 }
 0x21e   : > { %4446 = vst [vmem:[#allocation95_spill] sm:$0xff] %v3303_v9  ;;  %v1151_v15 = vsub.f32 %v3036_v8, %v3305_v38  ;;  %v1153_v44 = vsub.f32 %v3040_v10, %v3305_v38  ;;  %v1155_v11 = vsub.f32 %v3044_v12, %v3305_v38  ;;  %v1157_v8 = vsub.f32 %v4454_v21, %v3305_v38  ;;  %v4456_v10 = vld [vmem:[#allocation52_spill] sm:$0xff] }
 0x21f   : > { %v3308_v35 = vpop.f32.mrf.mxu1  ;;  %v1382_v41 = vmax.f32 %v1380_v36, %v4459_v49  ;;  %v1159_v33 = vsub.f32 %v3052_v16, %v3305_v38  ;;  %v1346_v21 = vmax.f32 %v1344_v39, %v4461_v23  ;;  %v4466_v49 = vld [vmem:[#allocation61_spill] sm:$0xff] }
 0x220   : > { %4447 = vst [vmem:[#allocation96_spill] sm:$0xff] %v3308_v35  ;;  %v4457_v35 = vld [vmem:[#allocation45_spill] sm:$0xff]  ;;  %v1215_v5 = vmul.f32 1.442695, %v1151_v15  ;;  %v1219_v58 = vmul.f32 1.442695, %v1153_v44  ;;  %v1146_v44 = vmax.f32 %v1144_v24, %v1145_v52 }
 0x221   : > { %v3310_v53 = vpop.f32.mrf.mxu1  ;;  %v1381_v12 = vmax.f32 %v4457_v35, %v4456_v10  ;;  %v1223_v2 = vmul.f32 1.442695, %v1155_v11  ;;  %v4464_v10 = vld [vmem:[#allocation19_spill] sm:$0xff]  ;;  %v1227_v15 = vmul.f32 1.442695, %v1157_v8  ;;  %v1384_v16 = vmax.f32 %v1382_v41, %v4466_v49  ;;  %v4467_v11 = vld [vmem:[#allocation62_spill] sm:$0xff] }
 0x222   : > { %4448 = vst [vmem:[#allocation97_spill] sm:$0xff] %v3310_v53  ;;  %2296 = vpow2.f32 %v1215_v5  ;;  %v1348_v35 = vmax.f32 %v1346_v21, %v4467_v11  ;;  %v4469_v39 = vld [vmem:[#allocation65_spill] sm:$0xff]  ;;  %v1231_v5 = vmul.f32 1.442695, %v1159_v33  ;;  %v4471_v24 = vld [vmem:[#allocation68_spill] sm:$0xff]  ;;  %v4473_v21 = vld [vmem:[#allocation22_spill] sm:$0xff] }
 0x223   : > { %v3318_v19 = vpop.f32.mrf.mxu1  ;;  %v1383_v42 = vmax.f32 %v1381_v12, %v4462_v50  ;;  %2298 = vpow2.f32 %v1219_v58  ;;  %v4470_v58 = vld [vmem:[#allocation67_spill] sm:$0xff] }
 0x224   : > { %4449 = vst [vmem:[#allocation98_spill] sm:$0xff] %v3318_v19  ;;  %v1345_v19 = vmax.f32 %v1343_v54, %v4458_v57  ;;  %v1161_v54 = vsub.f32 %v4464_v10, %v3305_v38  ;;  %v4468_v57 = vld [vmem:[#allocation64_spill] sm:$0xff]  ;;  %2300 = vpow2.f32 %v1223_v2  ;;  %v1386_v8 = vmax.f32 %v1384_v16, %v4470_v58  ;;  %v4472_v10 = vld [vmem:[#allocation70_spill] sm:$0xff] }
 0x225   : > { %v3328_v18 = vpop.f32.mrf.mxu1  ;;  %v1350_v52 = vmax.f32 %v1348_v35, %v4471_v24  ;;  %2302 = vpow2.f32 %v1227_v15 }
 0x226   : > { %4455 = vst [vmem:[#allocation16_spill] sm:$0xff] %v3328_v18  ;;  %v1347_v18 = vmax.f32 %v1345_v19, %v4463_v37  ;;  %v1163_v19 = vsub.f32 %v3060_v20, %v3305_v38  ;;  %v1388_v20 = vmax.f32 %v1386_v8, %v3198_v0  ;;  %2304 = vpow2.f32 %v1231_v5 }
 0x227   : > { %v3336_v31 = vpop.f32.mrf.mxu1  ;;  %v1352_v33 = vmax.f32 %v1350_v52, %v3204_v59  ;;  %v4476_v52 = vld [vmem:[#allocation26_spill] sm:$0xff] }
 0x228   : > { %4460 = vst [vmem:[#allocation99_spill] sm:$0xff] %v3336_v31  ;;  %v1385_v31 = vmax.f32 %v1383_v42, %v4468_v57  ;;  %v1349_v23 = vmax.f32 %v1347_v18, %v4469_v39  ;;  %v1165_v42 = vsub.f32 %v4473_v21, %v3305_v38  ;;  %v1235_v18 = vmul.f32 1.442695, %v1161_v54 }
 0x229   : > { %v3343_v36 = vpop.f32.mrf.mxu1  ;;  %v1147_v57 = vrot.slane %v1146_v44, 2  ;;  %v1390_v54 = vmax.f32 %v1388_v20, %v3227_v45  ;;  %v1354_v15 = vmax.f32 %v1352_v33, %v3235_v30 }
 0x22a   : > { %4465 = vst [vmem:[#allocation59_spill] sm:$0xff] %v3343_v36  ;;  %v1387_v50 = vmax.f32 %v1385_v31, %v4472_v10  ;;  %v1351_v41 = vmax.f32 %v1349_v23, %v3192_v63  ;;  %v4475_v31 = vld [vmem:[#allocation24_spill] sm:$0xff]  ;;  %v1239_v23 = vmul.f32 1.442695, %v1163_v19  ;;  %2306 = vpow2.f32 %v1235_v18  ;;  %v4484_v18 = vld [vmem:[#allocation35_spill] sm:$0xff] }
 0x22b   : > { %v3351_v12 = vpop.f32.mrf.mxu1  ;;  %v1167_v16 = vsub.f32 %v4475_v31, %v3305_v38  ;;  %v1392_v19 = vmax.f32 %v1390_v54, %v3259_v13  ;;  %v1356_v5 = vmax.f32 %v1354_v15, %v3267_v47 }
 0x22c   : > { %v1389_v2 = vmax.f32 %v1387_v50, %v3210_v14  ;;  %v1353_v35 = vmax.f32 %v1351_v41, %v3218_v34  ;;  %v1169_v50 = vsub.f32 %v4476_v52, %v3305_v38  ;;  %v1243_v41 = vmul.f32 1.442695, %v1165_v42  ;;  %v4482_v52 = vld [vmem:[#allocation31_spill] sm:$0xff] }
 0x22d   : > { %v3359_v49 = vpop.f32.mrf.mxu1  ;;  %v1148_v14 = vmax.f32 %v1146_v44, %v1147_v57  ;;  %2308 = vpow2.f32 %v1239_v23  ;;  %v3388_v57 = vmax.f32 %v1392_v19, %v3281_v17  ;;  %v3391_v44 = vmax.f32 %v1356_v5, %v3285_v46  ;;  %v4483_v5 = vld [vmem:[#allocation33_spill] sm:$0xff] }
 0x22e   : > { %4474 = vst [vmem:[#allocation19_spill] sm:$0xff] %v3359_v49  ;;  %v1391_v21 = vmax.f32 %v1389_v2, %v3243_v32  ;;  %v1355_v8 = vmax.f32 %v1353_v35, %v3251_v26  ;;  %v1171_v2 = vsub.f32 %v3076_v28, %v3305_v38  ;;  %v1247_v35 = vmul.f32 1.442695, %v1167_v16  ;;  %v4479_v28 = vld [vmem:[#allocation29_spill] sm:$0xff] }
 0x22f   : > { %v3367_v10 = vpop.f32.mrf.mxu1  ;;  %v3398_v54 = vpop.eup %2296  ;;  %v1173_v23 = vsub.f32 %v4479_v28, %v3305_v38  ;;  %2310 = vpow2.f32 %v1243_v41  ;;  %v1251_v16 = vmul.f32 1.442695, %v1169_v50  ;;  %v1149_v15 = vrot.slane %v1148_v14, 1  ;;  %v4485_v41 = vld [vmem:[#allocation37_spill] sm:$0xff] }
 0x230   : > { %v1393_v20 = vmax.f32 %v1391_v21, %v3273_v29  ;;  %v3381_v33 = vmax.f32 %v1355_v8, %v3277_v27  ;;  %4478 = vst [vmem:[#allocation22_spill] sm:$0xff] %v3398_v54  ;;  %v3404_v8 = vpop.eup %2298  ;;  %v1175_v19 = vsub.f32 %v4482_v52, %v3305_v38  ;;  %v1181_v50 = vsub.f32 %v4485_v41, %v3305_v38  ;;  %v4489_v41 = vld [vmem:[#allocation49_spill] sm:$0xff] }
 0x231   : > { %v3375_v0 = vpop.f32.mrf.mxu1  ;;  %4481 = vst [vmem:[#allocation26_spill] sm:$0xff] %v3404_v8  ;;  %2312 = vpow2.f32 %v1247_v35  ;;  %v1255_v28 = vmul.f32 1.442695, %v1171_v2  ;;  %v1609_v45 = vadd.f32 %v3404_v8, %v3398_v54  ;;  %v3420_v52 = vpop.eup %2300  ;;  %v1187_v17 = vsub.f32 %v3116_v48, %v3305_v38 }
 0x232   : > { %4477 = vst [vmem:[#allocation62_spill] sm:$0xff] %v3375_v0  ;;  %v3394_v42 = vmax.f32 %v1393_v20, %v3289_v22  ;;  %v1177_v20 = vsub.f32 %v4483_v5, %v3305_v38  ;;  %v1179_v22 = vsub.f32 %v4484_v18, %v3305_v38  ;;  %4487 = vst [vmem:[#allocation31_spill] sm:$0xff] %v3420_v52  ;;  %v4488_v18 = vld [vmem:[#allocation42_spill] sm:$0xff]  ;;  %2314 = vpow2.f32 %v1251_v16  ;;  %v3435_v46 = vpop.eup %2302 }
 0x233   : > { %v3385_v31 = vpop.f32.mrf.mxu1  ;;  %v1183_v5 = vsub.f32 %v3100_v40, %v3305_v38  ;;  %v1185_v13 = vsub.f32 %v4488_v18, %v3305_v38  ;;  %v1189_v35 = vsub.f32 %v4489_v41, %v3305_v38  ;;  %v1191_v2 = vsub.f32 %v3132_v56, %v3305_v38  ;;  %4491 = vst [vmem:[#allocation35_spill] sm:$0xff] %v3435_v46  ;;  %v3448_v27 = vpop.eup %2304 }
 0x234   : > { %v1259_v29 = vmul.f32 1.442695, %v1173_v23  ;;  %v1610_v58 = vadd.f32 %v3420_v52, %v1609_v45  ;;  %v1193_v40 = vsub.f32 %v3140_v60, %v3305_v38  ;;  %v1195_v48 = vsub.f32 %v3148_v1, %v3305_v38  ;;  %4492 = vst [vmem:[#allocation37_spill] sm:$0xff] %v3448_v27 }
 0x235   : > { %v3402_v21 = vpop.f32.mrf.mxu1  ;;  %v1197_v18 = vsub.f32 %v3156_v7, %v3305_v38  ;;  %v1263_v41 = vmul.f32 1.442695, %v1175_v19  ;;  %v1199_v56 = vsub.f32 %v3164_v61, %v3305_v38  ;;  %2316 = vpow2.f32 %v1255_v28 }
 0x236   : > { %4480 = vst [vmem:[#allocation24_spill] sm:$0xff] %v3402_v21  ;;  %v1267_v23 = vmul.f32 1.442695, %v1177_v20  ;;  %v1611_v45 = vadd.f32 %v3435_v46, %v1610_v58  ;;  %v1201_v60 = vsub.f32 %v3178_v55, %v3305_v38  ;;  %v1203_v1 = vsub.f32 %v3190_v51, %v3305_v38 }
 0x237   : > { %v3418_v32 = vpop.f32.mrf.mxu1  ;;  %v1271_v8 = vmul.f32 1.442695, %v1179_v22  ;;  %v3454_v7 = vmax.f32 %v1148_v14, %v1149_v15  ;;  %v1205_v61 = vsub.f32 %v3202_v43, %v3305_v38  ;;  %2318 = vpow2.f32 %v1259_v29  ;;  %v3461_v28 = vpop.eup %2306  ;;  %v4495_v22 = vld [vmem:[#allocation83_spill] sm:$0xff] }
 0x238   : > { %4486 = vst [vmem:[#allocation29_spill] sm:$0xff] %v3418_v32  ;;  %v1275_v19 = vmul.f32 1.442695, %v1181_v50  ;;  %v1612_v58 = vadd.f32 %v3448_v27, %v1611_v45  ;;  %4494 = vst [vmem:[#allocation49_spill] sm:$0xff] %v3461_v28  ;;  %v1207_v55 = vsub.f32 %v3216_v3, %v3305_v38  ;;  %v1209_v51 = vsub.f32 %v3233_v6, %v3305_v38  ;;  %v4496_v6 = vld [vmem:[#allocation13_spill] sm:$0xff] }
 0x239   : > { %v3433_v54 = vpop.f32.mrf.mxu1  ;;  %2320 = vpow2.f32 %v1263_v41  ;;  %v1279_v14 = vmul.f32 1.442695, %v1183_v5  ;;  %v1211_v15 = vsub.f32 %v4495_v22, %v3305_v38  ;;  %v1283_v29 = vmul.f32 1.442695, %v1185_v13  ;;  %v4497_v13 = vld [vmem:[#allocation14_spill] sm:$0xff] }
 0x23a   : > { %4490 = vst [vmem:[#allocation33_spill] sm:$0xff] %v3433_v54  ;;  %2322 = vpow2.f32 %v1267_v23  ;;  %v1613_v43 = vadd.f32 %v3461_v28, %v1612_v58  ;;  %v3472_v45 = vpop.eup %2308  ;;  %v1287_v3 = vmul.f32 1.442695, %v1187_v17  ;;  %v1152_v41 = vsub.f32 %v4496_v6, %v3454_v7 }
 0x23b   : > { %v3446_v16 = vpop.f32.mrf.mxu1  ;;  %2324 = vpow2.f32 %v1271_v8  ;;  %v1291_v5 = vmul.f32 1.442695, %v1189_v35  ;;  %v1154_v23 = vsub.f32 %v4497_v13, %v3454_v7  ;;  %v1295_v52 = vmul.f32 1.442695, %v1191_v2  ;;  %v4499_v35 = vld [vmem:[#allocation15_spill] sm:$0xff] }
 0x23c   : > { %2326 = vpow2.f32 %v1275_v19  ;;  %v1614_v22 = vadd.f32 %v3472_v45, %v1613_v43  ;;  %v3483_v26 = vpop.eup %2310  ;;  %v1299_v30 = vmul.f32 1.442695, %v1193_v40  ;;  %v1360_v17 = vmax.f32 %v3391_v44, %v3303_v9  ;;  %v4500_v44 = vld [vmem:[#allocation17_spill] sm:$0xff] }
 0x23d   : > { %v3459_v20 = vpop.f32.mrf.mxu1  ;;  %2328 = vpow2.f32 %v1279_v14  ;;  %v1303_v8 = vmul.f32 1.442695, %v1195_v48  ;;  %v1156_v43 = vsub.f32 %v4499_v35, %v3454_v7  ;;  %v1307_v47 = vmul.f32 1.442695, %v1197_v18 }
 0x23e   : > { %4493 = vst [vmem:[#allocation42_spill] sm:$0xff] %v3459_v20  ;;  %2330 = vpow2.f32 %v1283_v29  ;;  %v1615_v19 = vadd.f32 %v3483_v26, %v1614_v22  ;;  %v3492_v13 = vpop.eup %2312  ;;  %v1311_v34 = vmul.f32 1.442695, %v1199_v56  ;;  %v1217_v14 = vmul.f32 1.442695, %v1152_v41  ;;  %v4502_v56 = vld [vmem:[#allocation18_spill] sm:$0xff] }
 0x23f   : > { %v3470_v50 = vpop.f32.mrf.mxu1  ;;  %2332 = vpow2.f32 %v1287_v3  ;;  %v1158_v40 = vsub.f32 %v4500_v44, %v3454_v7  ;;  %v1221_v48 = vmul.f32 1.442695, %v1154_v23  ;;  %v3499_v22 = vpop.eup %2314  ;;  %v1315_v35 = vmul.f32 1.442695, %v1201_v60 }
 0x240   : > { %2334 = vpow2.f32 %v1291_v5  ;;  %v1616_v2 = vadd.f32 %v3492_v13, %v1615_v19  ;;  %v1319_v9 = vmul.f32 1.442695, %v1203_v1  ;;  %v3501_v59 = vmul.f32 1.442695, %v1205_v61 }
 0x241   : > { %v3481_v58 = vpop.f32.mrf.mxu1  ;;  %2336 = vpow2.f32 %v1295_v52  ;;  %v1160_v3 = vsub.f32 %v4502_v56, %v3454_v7  ;;  %v1225_v41 = vmul.f32 1.442695, %v1156_v43  ;;  %v3510_v23 = vmul.f32 1.442695, %v1207_v55  ;;  %v4505_v55 = vld [vmem:[#allocation21_spill] sm:$0xff] }
 0x242   : > { %4498 = vst [vmem:[#allocation83_spill] sm:$0xff] %v3481_v58  ;;  %2338 = vpow2.f32 %v1299_v30  ;;  %v1617_v18 = vadd.f32 %v3499_v22, %v1616_v2  ;;  %v3508_v19 = vpop.eup %2316  ;;  %v3512_v44 = vmul.f32 1.442695, %v1209_v51  ;;  %v3514_v52 = vmul.f32 1.442695, %v1211_v15  ;;  %v4503_v30 = vld [vmem:[#allocation20_spill] sm:$0xff] }
 0x243   : > { %v3490_v6 = vpop.f32.mrf.mxu1  ;;  %2340 = vpow2.f32 %v1217_v14  ;;  %v1162_v1 = vsub.f32 %v4503_v30, %v3454_v7  ;;  %v1229_v61 = vmul.f32 1.442695, %v1158_v40  ;;  %v1164_v56 = vsub.f32 %v4505_v55, %v3454_v7  ;;  %v4507_v14 = vld [vmem:[#allocation16_spill] sm:$0xff]  ;;  %v4508_v40 = vld [vmem:[#allocation23_spill] sm:$0xff]  ;;  %v4509_v55 = vld [vmem:[#allocation25_spill] sm:$0xff] }
 0x244   : > { %v1618_v60 = vadd.f32 %v3508_v19, %v1617_v18  ;;  %2342 = vpow2.f32 %v1221_v48  ;;  %v3521_v43 = vpop.eup %2318  ;;  %v4506_v51 = vmax.f32 %v3381_v33, %v3293_v62  ;;  %v1362_v18 = vmax.f32 %v1360_v17, %v4507_v14 }
 0x245   : > { %v3497_v29 = vpop.f32.mrf.mxu1  ;;  %2344 = vpow2.f32 %v1303_v8  ;;  %v1166_v30 = vsub.f32 %v4508_v40, %v3454_v7  ;;  %v1233_v63 = vmul.f32 1.442695, %v1160_v3  ;;  %v1168_v27 = vsub.f32 %v4509_v55, %v3454_v7 }
 0x246   : > { %4501 = vst [vmem:[#allocation13_spill] sm:$0xff] %v3497_v29  ;;  %v1361_v15 = vmax.f32 %v4506_v51, %v3310_v53  ;;  %v3530_v46 = vpop.eup %2320  ;;  %v1619_v48 = vadd.f32 %v3521_v43, %v1618_v60  ;;  %2346 = vpow2.f32 %v1225_v41  ;;  %v1364_v51 = vmax.f32 %v1362_v18, %v3359_v49  ;;  %v4510_v60 = vld [vmem:[#allocation27_spill] sm:$0xff] }
 0x247   : > { %v3506_v5 = vpop.f32.mrf.mxu1  ;;  %v3535_v8 = vpop.eup %2322  ;;  %2348 = vpow2.f32 %v1307_v47  ;;  %v1170_v53 = vsub.f32 %v4510_v60, %v3454_v7  ;;  %v1237_v41 = vmul.f32 1.442695, %v1162_v1  ;;  %v4511_v47 = vld [vmem:[#allocation28_spill] sm:$0xff]  ;;  %v4513_v60 = vld [vmem:[#allocation38_spill] sm:$0xff]  ;;  %v1241_v1 = vmul.f32 1.442695, %v1164_v56 }
 0x248   : > { %v1363_v33 = vmax.f32 %v1361_v15, %v3343_v36  ;;  %v3541_v17 = vpop.eup %2324  ;;  %v1620_v14 = vadd.f32 %v3530_v46, %v1619_v48  ;;  %2350 = vpow2.f32 %v1229_v61  ;;  %v1172_v55 = vsub.f32 %v4511_v47, %v3454_v7 }
 0x249   : > { %v3519_v2 = vpop.f32.mrf.mxu1  ;;  %v3548_v40 = vpop.eup %2326  ;;  %2352 = vpow2.f32 %v1311_v34  ;;  %v1366_v18 = vmax.f32 %v1364_v51, %v3402_v21  ;;  %v1182_v61 = vsub.f32 %v4513_v60, %v3454_v7  ;;  %v4515_v34 = vld [vmem:[#allocation30_spill] sm:$0xff]  ;;  %v4547_v24 = vmax.f32 %v3388_v57, %v3299_v4 }
 0x24a   : > { %4504 = vst [vmem:[#allocation14_spill] sm:$0xff] %v3519_v2  ;;  %v1365_v15 = vmax.f32 %v1363_v33, %v3375_v0  ;;  %v3554_v49 = vpop.eup %2328  ;;  %v1621_v48 = vadd.f32 %v3535_v8, %v1620_v14  ;;  %2354 = vpow2.f32 %v1233_v63  ;;  %v1174_v62 = vsub.f32 %v4515_v34, %v3454_v7  ;;  %v4517_v14 = vld [vmem:[#allocation36_spill] sm:$0xff] }
 0x24b   : > { %v3546_v3 = vpop.f32.mrf.mxu1  ;;  %4512 = vst [vmem:[#allocation15_spill] sm:$0xff] %v3554_v49  ;;  %v3559_v36 = vpop.eup %2330  ;;  %2356 = vpow2.f32 %v1315_v35  ;;  %v1368_v33 = vmax.f32 %v1366_v18, %v3459_v20  ;;  %v1180_v0 = vsub.f32 %v4517_v14, %v3454_v7  ;;  %v1245_v63 = vmul.f32 1.442695, %v1166_v30 }
 0x24c   : > { %4514 = vst [vmem:[#allocation17_spill] sm:$0xff] %v3559_v36  ;;  %v1367_v47 = vmax.f32 %v1365_v15, %v3433_v54  ;;  %v3565_v51 = vpop.eup %2332  ;;  %v1622_v21 = vadd.f32 %v3541_v17, %v1621_v48  ;;  %2358 = vpow2.f32 %v1237_v41  ;;  %v1249_v35 = vmul.f32 1.442695, %v1168_v27  ;;  %v4521_v48 = vld [vmem:[#allocation34_spill] sm:$0xff] }
 0x24d   : > { %4516 = vst [vmem:[#allocation18_spill] sm:$0xff] %v3565_v51  ;;  %v3570_v56 = vpop.f32.mrf.mxu1  ;;  %v3572_v60 = vpop.eup %2334  ;;  %2360 = vpow2.f32 %v1319_v9  ;;  %v1370_v15 = vmax.f32 %v1368_v33, %v3497_v29  ;;  %v1178_v54 = vsub.f32 %v4521_v48, %v3454_v7  ;;  %v1277_v41 = vmul.f32 1.442695, %v1182_v61 }
 0x24e   : > { %4518 = vst [vmem:[#allocation20_spill] sm:$0xff] %v3570_v56  ;;  %4519 = vst [vmem:[#allocation21_spill] sm:$0xff] %v3572_v60  ;;  %v1369_v34 = vmax.f32 %v1367_v47, %v3481_v58  ;;  %v3576_v18 = vpop.eup %2336  ;;  %v1623_v20 = vadd.f32 %v3548_v40, %v1622_v21  ;;  %2362 = vpow2.f32 %v1241_v1  ;;  %v1253_v14 = vmul.f32 1.442695, %v1170_v53  ;;  %v4524_v21 = vld [vmem:[#allocation32_spill] sm:$0xff]  ;;  %v4538_v58 = vld [vmem:[#allocation63_spill] sm:$0xff] }
 0x24f   : > { %4520 = vst [vmem:[#allocation23_spill] sm:$0xff] %v3576_v18  ;;  %v3581_v30 = vpop.eup %2338  ;;  %2364 = vpow2.f32 %v3501_v59  ;;  %v1372_v9 = vmax.f32 %v1370_v15, %v3570_v56  ;;  %v1176_v29 = vsub.f32 %v4524_v21, %v3454_v7  ;;  %v1273_v48 = vmul.f32 1.442695, %v1180_v0  ;;  %v4528_v21 = vld [vmem:[#allocation40_spill] sm:$0xff] }
 0x250   : > { %4522 = vst [vmem:[#allocation25_spill] sm:$0xff] %v3581_v30  ;;  %v1371_v27 = vmax.f32 %v1369_v34, %v3519_v2  ;;  %v3586_v47 = vpop.eup %2340  ;;  %v1624_v33 = vadd.f32 %v3554_v49, %v1623_v20  ;;  %2366 = vpow2.f32 %v1245_v63  ;;  %v4526_v61 = vsub.f32 %v3265_v25, %v3305_v38 }
 0x251   : > { %4523 = vst [vmem:[#allocation27_spill] sm:$0xff] %v3586_v47  ;;  %v3591_v1 = vpop.eup %2342  ;;  %2368 = vpow2.f32 %v1249_v35  ;;  %v1257_v53 = vmul.f32 1.442695, %v1172_v55  ;;  %v1269_v20 = vmul.f32 1.442695, %v1178_v54  ;;  %v1184_v49 = vsub.f32 %v4528_v21, %v3454_v7 }
 0x252   : > { %4525 = vst [vmem:[#allocation28_spill] sm:$0xff] %v3591_v1  ;;  %v3596_v59 = vmul.f32 1.442695, %v4526_v61  ;;  %v1373_v34 = vmax.f32 %v1371_v27, %v1372_v9  ;;  %v3598_v15 = vpop.eup %2344  ;;  %v1625_v56 = vadd.f32 %v3559_v36, %v1624_v33  ;;  %2370 = vpow2.f32 %v1277_v41  ;;  %v4530_v9 = vld [vmem:[#allocation44_spill] sm:$0xff]  ;;  %v4531_v61 = vld [vmem:[#allocation47_spill] sm:$0xff]  ;;  %v4534_v36 = vld [vmem:[#allocation54_spill] sm:$0xff] }
 0x253   : > { %v1646_v63 = vadd.f32 %v3591_v1, %v3586_v47  ;;  %v3603_v0 = vpop.eup %2346  ;;  %2372 = vpow2.f32 %v1253_v14  ;;  %v1261_v25 = vmul.f32 1.442695, %v1174_v62  ;;  %v1265_v27 = vmul.f32 1.442695, %v1176_v29  ;;  %v4541_v1 = vld [vmem:[#allocation96_spill] sm:$0xff]  ;;  %v4544_v47 = vld [vmem:[#allocation81_spill] sm:$0xff] }
 0x254   : > { %4527 = vst [vmem:[#allocation38_spill] sm:$0xff] %v3603_v0  ;;  %v1374_v38 = vrot.slane %v1373_v34, 4  ;;  %v3607_v35 = vpop.eup %2348  ;;  %v1626_v55 = vadd.f32 %v3565_v51, %v1625_v56  ;;  %2374 = vpow2.f32 %v1273_v48  ;;  %v1186_v33 = vsub.f32 %v4530_v9, %v3454_v7  ;;  %v4532_v56 = vld [vmem:[#allocation51_spill] sm:$0xff]  ;;  %v4535_v51 = vld [vmem:[#allocation57_spill] sm:$0xff] }
 0x255   : > { %v1647_v54 = vadd.f32 %v3603_v0, %v1646_v63  ;;  %v3611_v41 = vpop.eup %2350  ;;  %v1188_v2 = vsub.f32 %v4531_v61, %v3454_v7  ;;  %2376 = vpow2.f32 %v1257_v53  ;;  %v1190_v29 = vsub.f32 %v4532_v56, %v3454_v7 }
 0x256   : > { %4529 = vst [vmem:[#allocation30_spill] sm:$0xff] %v3611_v41  ;;  %v1375_v14 = vmax.f32 %v1373_v34, %v1374_v38  ;;  %v3617_v62 = vpop.eup %2352  ;;  %v1627_v21 = vadd.f32 %v3572_v60, %v1626_v55  ;;  %2378 = vpow2.f32 %v1269_v20  ;;  %v1192_v9 = vsub.f32 %v4534_v36, %v3454_v7  ;;  %v4536_v55 = vld [vmem:[#allocation60_spill] sm:$0xff]  ;;  %v4539_v60 = vld [vmem:[#allocation66_spill] sm:$0xff] }
 0x257   : > { %v1648_v48 = vadd.f32 %v3611_v41, %v1647_v54  ;;  %v3623_v63 = vpop.eup %2354  ;;  %v1194_v61 = vsub.f32 %v4535_v51, %v3454_v7  ;;  %2380 = vpow2.f32 %v1261_v25  ;;  %v1196_v56 = vsub.f32 %v4536_v55, %v3454_v7  ;;  %v4540_v25 = vld [vmem:[#allocation69_spill] sm:$0xff]  ;;  %v4546_v41 = vld [vmem:[#allocation98_spill] sm:$0xff] }
 0x258   : > { %4533 = vst [vmem:[#allocation36_spill] sm:$0xff] %v3623_v63  ;;  %v1376_v53 = vrot.slane %v1375_v14, 2  ;;  %v3629_v34 = vpop.eup %2356  ;;  %v1628_v38 = vadd.f32 %v3576_v18, %v1627_v21  ;;  %2382 = vpow2.f32 %v1265_v27  ;;  %v1198_v36 = vsub.f32 %v4538_v58, %v3454_v7 }
 0x259   : > { %v1649_v20 = vadd.f32 %v3623_v63, %v1648_v48  ;;  %v3635_v54 = vpop.eup %2358  ;;  %v1200_v51 = vsub.f32 %v4539_v60, %v3454_v7  ;;  %v1397_v21 = vmax.f32 %v3394_v42, %v4541_v1  ;;  %2384 = vpow2.f32 %v3510_v23  ;;  %v4542_v48 = vld [vmem:[#allocation72_spill] sm:$0xff]  ;;  %v4543_v60 = vld [vmem:[#allocation75_spill] sm:$0xff] }
 0x25a   : > { %4537 = vst [vmem:[#allocation34_spill] sm:$0xff] %v3635_v54  ;;  %v3645_v18 = vpop.eup %2360  ;;  %v1629_v27 = vadd.f32 %v3581_v30, %v1628_v38  ;;  %v4545_v42 = vld [vmem:[#allocation99_spill] sm:$0xff]  ;;  %v1377_v63 = vmax.f32 %v1375_v14, %v1376_v53  ;;  %2386 = vpow2.f32 %v3512_v44  ;;  %v1281_v38 = vmul.f32 1.442695, %v1184_v49 }
 0x25b   : > { %v1650_v58 = vadd.f32 %v3635_v54, %v1649_v20  ;;  %v3652_v0 = vpop.eup %2362  ;;  %v1399_v1 = vmax.f32 %v1397_v21, %v4545_v42  ;;  %v1285_v30 = vmul.f32 1.442695, %v1186_v33  ;;  %v1289_v39 = vmul.f32 1.442695, %v1188_v2 }
 0x25c   : > { %v3659_v28 = vpop.eup %2364  ;;  %v1630_v23 = vadd.f32 %v3598_v15, %v1629_v27  ;;  %v1398_v54 = vmax.f32 %v4547_v24, %v4546_v41  ;;  %2388 = vpow2.f32 %v3514_v52  ;;  %v1293_v49 = vmul.f32 1.442695, %v1190_v29 }
 0x25d   : > { %v1651_v20 = vadd.f32 %v3652_v0, %v1650_v58  ;;  %v3664_v55 = vpop.eup %2366  ;;  %v1401_v14 = vmax.f32 %v1399_v1, %v3367_v10  ;;  %v1297_v33 = vmul.f32 1.442695, %v1192_v9  ;;  %v1378_v57 = vrot.slane %v1377_v63, 1 }
 0x25e   : > { %v3671_v53 = vpop.eup %2368  ;;  %v1631_v44 = vadd.f32 %v3607_v35, %v1630_v23  ;;  %v1400_v2 = vmax.f32 %v1398_v54, %v3351_v12  ;;  %2390 = vpow2.f32 %v3596_v59  ;;  %v1301_v52 = vmul.f32 1.442695, %v1194_v61 }
 0x25f   : > { %v1652_v21 = vadd.f32 %v3664_v55, %v1651_v20  ;;  %v3676_v27 = vpop.eup %2370  ;;  %v1403_v58 = vmax.f32 %v1401_v14, %v3418_v32  ;;  %2392 = vpow2.f32 %v1281_v38  ;;  %v1305_v9 = vmul.f32 1.442695, %v1196_v56 }
 0x260   : > { %v3680_v24 = vpop.eup %2372  ;;  %v1632_v1 = vadd.f32 %v3617_v62, %v1631_v44  ;;  %1757 = vmatprep.subr.mxu0 %v3676_v27  ;;  %v1402_v54 = vmax.f32 %v1400_v2, %v3385_v31  ;;  %2394 = vpow2.f32 %v1285_v30  ;;  %v1309_v44 = vmul.f32 1.442695, %v1198_v36 }
 0x261   : > { %v1653_v23 = vadd.f32 %v3671_v53, %v1652_v21  ;;  %v3686_v29 = vpop.eup %2374  ;;  %1758 = vmatpush1.msra.mxu0 %v3548_v40  ;;  %v1405_v20 = vmax.f32 %v1403_v58, %v3470_v50  ;;  %v3694_v21 = vpop.f32.mrf.mxu1  ;;  %2396 = vpow2.f32 %v1289_v39  ;;  %v3699_v38 = vmax.f32 %v1377_v63, %v1378_v57 }
 0x262   : > { %v2377_v14 = vpop.eup %2376  ;;  %v1633_v59 = vadd.f32 %v3629_v34, %v1632_v1  ;;  %1759 = vmatprep.subr.mxu0 %v3686_v29  ;;  %v1404_v56 = vmax.f32 %v1402_v54, %v3446_v16  ;;  %2398 = vpow2.f32 %v1293_v49  ;;  %v1313_v36 = vmul.f32 1.442695, %v1200_v51 }
 0x263   : > { %v1654_v61 = vadd.f32 %v3680_v24, %v1653_v23  ;;  %v2379_v32 = vpop.eup %2378  ;;  %1760 = vmatpush1.msra.mxu0 %v3541_v17  ;;  %v1407_v40 = vmax.f32 %v1405_v20, %v3506_v5  ;;  %2400 = vpow2.f32 %v1297_v33  ;;  %v4548_v39 = vsub.f32 %v4540_v25, %v3454_v7  ;;  %v4550_v25 = vld [vmem:[#allocation39_spill] sm:$0xff] }
 0x264   : > { %v2381_v2 = vpop.eup %2380  ;;  %v1634_v30 = vadd.f32 %v3645_v18, %v1633_v59  ;;  %1761 = vmatprep.subr.mxu0 %v2379_v32  ;;  %v1406_v17 = vmax.f32 %v1404_v56, %v3490_v6  ;;  %2402 = vpow2.f32 %v1301_v52  ;;  %v4549_v51 = vsub.f32 %v4542_v48, %v3454_v7  ;;  %v4551_v59 = vld [vmem:[#allocation43_spill] sm:$0xff]  ;;  %v4552_v56 = vld [vmem:[#allocation46_spill] sm:$0xff] }
 0x265   : > { %v1655_v58 = vadd.f32 %v2377_v14, %v1654_v61  ;;  %v2383_v1 = vpop.eup %2382  ;;  %v1317_v23 = vmul.f32 1.442695, %v4548_v39  ;;  %1762 = vmatpush1.msra.mxu0 %v3535_v8  ;;  %v1409_v63 = vmax.f32 %v1407_v40, %v3694_v21  ;;  %2404 = vpow2.f32 %v1305_v9 }
 0x266   : > { %v1635_v57 = vadd.f32 %v3659_v28, %v1634_v30  ;;  %v1321_v49 = vmul.f32 1.442695, %v4549_v51  ;;  %1763 = vmatprep.subr.mxu0 %v2383_v1  ;;  %v3712_v33 = vpop.eup %2384  ;;  %v1408_v8 = vmax.f32 %v1406_v17, %v3546_v3  ;;  %v1417_v20 = vsub.f32 %v4550_v25, %v3699_v38 }
 0x267   : > { %v1656_v54 = vadd.f32 %v2381_v2, %v1655_v58  ;;  %1764 = vmatpush1.msra.mxu0 %v3530_v46  ;;  %v1419_v61 = vsub.f32 %v4551_v59, %v3699_v38  ;;  %2406 = vpow2.f32 %v1309_v44  ;;  %v1421_v40 = vsub.f32 %v4552_v56, %v3699_v38  ;;  %v3723_v30 = vpop.eup %2386  ;;  %v4553_v46 = vld [vmem:[#allocation85_spill] sm:$0xff]  ;;  %v4554_v58 = vld [vmem:[#allocation94_spill] sm:$0xff] }
 0x268   : > { %v1636_v52 = vadd.f32 %v3712_v33, %v1635_v57  ;;  %1765 = vmatprep.subr.mxu0 %v2381_v2  ;;  %v1212_v9 = vsub.f32 %v4553_v46, %v3454_v7  ;;  %v1214_v39 = vsub.f32 %v4554_v58, %v3454_v7  ;;  %2408 = vpow2.f32 %v1313_v36  ;;  %v4555_v2 = vld [vmem:[#allocation50_spill] sm:$0xff] }
 0x269   : > { %v1657_v48 = vadd.f32 %v2383_v1, %v1656_v54  ;;  %1766 = vmatpush1.msra.mxu0 %v3521_v43  ;;  %v1410_v17 = vmax.f32 %v1408_v8, %v1409_v63  ;;  %2410 = vpow2.f32 %v1317_v23  ;;  %v1423_v1 = vsub.f32 %v4555_v2, %v3699_v38  ;;  %v3733_v51 = vpop.eup %2388 }
 0x26a   : > { %v1637_v57 = vadd.f32 %v3723_v30, %v1636_v52  ;;  %1767 = vmatprep.subr.mxu0 %v2377_v14  ;;  %2412 = vpow2.f32 %v1321_v49  ;;  %v4556_v54 = vsub.f32 %v4543_v60, %v3454_v7  ;;  %v1481_v36 = vmul.f32 1.442695, %v1417_v20  ;;  %v4558_v60 = vld [vmem:[#allocation56_spill] sm:$0xff] }
 0x26b   : > { %v1658_v44 = vadd.f32 %v2379_v32, %v1657_v48  ;;  %1768 = vmatpush1.msra.mxu0 %v3508_v19  ;;  %v1485_v43 = vmul.f32 1.442695, %v1419_v61  ;;  %v4557_v32 = vld [vmem:[#allocation53_spill] sm:$0xff]  ;;  %v1489_v8 = vmul.f32 1.442695, %v1421_v40  ;;  %v3744_v59 = vpop.eup %2390  ;;  %v1427_v19 = vsub.f32 %v4558_v60, %v3699_v38 }
 0x26c   : > { %v1325_v25 = vmul.f32 1.442695, %v4556_v54  ;;  %v1638_v63 = vadd.f32 %v3733_v51, %v1637_v57  ;;  %1769 = vmatprep.subr.mxu0 %v3680_v24  ;;  %v1425_v14 = vsub.f32 %v4557_v32, %v3699_v38  ;;  %v1341_v49 = vmul.f32 1.442695, %v1214_v39  ;;  %v3749_v61 = vpop.eup %2392  ;;  %v4566_v32 = vld [vmem:[#allocation68_spill] sm:$0xff]  ;;  %v4567_v60 = vld [vmem:[#allocation37_spill] sm:$0xff] }
 0x26d   : > { %v1659_v23 = vadd.f32 %v3686_v29, %v1658_v44  ;;  %1770 = vmatpush1.msra.mxu0 %v3499_v22  ;;  %2414 = vpow2.f32 %v1481_v36  ;;  %v1411_v20 = vrot.slane %v1410_v17, 4  ;;  %v1493_v52 = vmul.f32 1.442695, %v1423_v1  ;;  %v3756_v48 = vpop.eup %2394  ;;  %v4560_v22 = vld [vmem:[#allocation78_spill] sm:$0xff]  ;;  %v4564_v36 = vld [vmem:[#allocation49_spill] sm:$0xff] }
 0x26e   : > { %v3752_v29 = vadd.f32 %v3744_v59, %v1638_v63  ;;  %1771 = vmatprep.subr.mxu0 %v3671_v53  ;;  %2416 = vpow2.f32 %v1485_v43  ;;  %v1208_v56 = vsub.f32 %v4560_v22, %v3454_v7  ;;  %v1337_v40 = vmul.f32 1.442695, %v1212_v9  ;;  %v3761_v46 = vpop.eup %2396 }
 0x26f   : > { %v1660_v24 = vadd.f32 %v3676_v27, %v1659_v23  ;;  %2418 = vpow2.f32 %v1325_v25  ;;  %1772 = vmatpush1.msra.mxu0 %v3492_v13  ;;  %v1429_v53 = vsub.f32 %v4463_v37, %v3699_v38  ;;  %v1497_v27 = vmul.f32 1.442695, %v1425_v14  ;;  %v3767_v39 = vpop.eup %2398  ;;  %v4565_v23 = vld [vmem:[#allocation36_spill] sm:$0xff] }
 0x270   : > { %4559 = vst [vmem:[#allocation32_spill] sm:$0xff] %v3752_v29  ;;  %1773 = vmatprep.subr.mxu0 %v3664_v55  ;;  %2420 = vpow2.f32 %v1489_v8  ;;  %v4561_v57 = vsub.f32 %v4544_v47, %v3454_v7  ;;  %v1412_v13 = vmax.f32 %v1410_v17, %v1411_v20  ;;  %v3773_v9 = vpop.eup %2400  ;;  %v1431_v37 = vsub.f32 %v4467_v11, %v3699_v38  ;;  %v4562_v47 = vld [vmem:[#allocation34_spill] sm:$0xff]  ;;  %v4563_v17 = vld [vmem:[#allocation65_spill] sm:$0xff] }
 0x271   : > { %v1661_v58 = vadd.f32 %v3749_v61, %v1660_v24  ;;  %2422 = vpow2.f32 %v1341_v49  ;;  %1774 = vmatpush1.msra.mxu0 %v3483_v26  ;;  %v1501_v55 = vmul.f32 1.442695, %v1427_v19  ;;  %v3779_v1 = vpop.eup %2402  ;;  %v1329_v54 = vmul.f32 1.442695, %v1208_v56  ;;  %v4568_v24 = vld [vmem:[#allocation30_spill] sm:$0xff] }
 0x272   : > { %v1333_v44 = vmul.f32 1.442695, %v4561_v57  ;;  %1775 = vmatprep.subr.mxu0 %v3652_v0  ;;  %2424 = vpow2.f32 %v1493_v52  ;;  %v3782_v7 = vpop.eup %2404  ;;  %v1433_v0 = vsub.f32 %v4563_v17, %v3699_v38  ;;  %v1505_v25 = vmul.f32 1.442695, %v1429_v53  ;;  %v4569_v52 = vld [vmem:[#allocation71_spill] sm:$0xff]  ;;  %v4572_v57 = vld [vmem:[#allocation38_spill] sm:$0xff] }
 0x273   : > { %v1662_v2 = vadd.f32 %v3756_v48, %v1661_v58  ;;  %2426 = vpow2.f32 %v1337_v40  ;;  %1776 = vmatpush1.msra.mxu0 %v3472_v45  ;;  %v1413_v43 = vrot.slane %v1412_v13, 2  ;;  %v1435_v14 = vsub.f32 %v4566_v32, %v3699_v38  ;;  %v4570_v40 = vld [vmem:[#allocation35_spill] sm:$0xff]  ;;  %v4579_v32 = vld [vmem:[#allocation84_spill] sm:$0xff] }
 0x274   : > { %1777 = vmatprep.subr.mxu0 %v4562_v47  ;;  %2428 = vpow2.f32 %v1497_v27  ;;  %v3788_v11 = vpop.eup %2406  ;;  %v1509_v8 = vmul.f32 1.442695, %v1431_v37  ;;  %v1437_v22 = vsub.f32 %v4569_v52, %v3699_v38  ;;  %v1513_v56 = vmul.f32 1.442695, %v1433_v0  ;;  %v4576_v47 = vld [vmem:[#allocation80_spill] sm:$0xff] }
 0x275   : > { %v1663_v26 = vadd.f32 %v3761_v46, %v1662_v2  ;;  %2430 = vpow2.f32 %v1333_v44  ;;  %1778 = vmatpush1.msra.mxu0 %v4564_v36  ;;  %v3791_v63 = vpop.eup %2408  ;;  %v1414_v58 = vmax.f32 %v1412_v13, %v1413_v43  ;;  %v4573_v44 = vld [vmem:[#allocation74_spill] sm:$0xff]  ;;  %v1517_v37 = vmul.f32 1.442695, %v1435_v14  ;;  %v4577_v13 = vld [vmem:[#allocation31_spill] sm:$0xff] }
 0x276   : > { %1779 = vmatprep.subr.mxu0 %v4565_v23  ;;  %2432 = vpow2.f32 %v1501_v55  ;;  %v3797_v49 = vpop.eup %2410  ;;  %v1439_v2 = vsub.f32 %v4573_v44, %v3699_v38  ;;  %v1443_v17 = vsub.f32 %v4576_v47, %v3699_v38  ;;  %v1521_v36 = vmul.f32 1.442695, %v1437_v22  ;;  %v4583_v44 = vld [vmem:[#allocation89_spill] sm:$0xff]  ;;  %v4584_v47 = vld [vmem:[#allocation91_spill] sm:$0xff] }
 0x277   : > { %v1664_v45 = vadd.f32 %v3767_v39, %v1663_v26  ;;  %2434 = vpow2.f32 %v1329_v54  ;;  %1780 = vmatpush1.msra.mxu0 %v4567_v60  ;;  %v3800_v19 = vpop.eup %2412  ;;  %v4575_v54 = vld [vmem:[#allocation77_spill] sm:$0xff]  ;;  %v1445_v14 = vsub.f32 %v4579_v32, %v3699_v38  ;;  %v4585_v32 = vld [vmem:[#allocation22_spill] sm:$0xff] }
 0x278   : > { %1781 = vmatprep.subr.mxu0 %v4568_v24  ;;  %2436 = vpow2.f32 %v1505_v25  ;;  %v1441_v26 = vsub.f32 %v4575_v54, %v3699_v38  ;;  %v4581_v24 = vld [vmem:[#allocation26_spill] sm:$0xff]  ;;  %v1449_v54 = vsub.f32 %v4583_v44, %v3699_v38  ;;  %v4587_v44 = vld [vmem:[#allocation95_spill] sm:$0xff] }
 0x279   : > { %v1665_v20 = vadd.f32 %v3773_v9, %v1664_v45  ;;  %1782 = vmatpush1.msra.mxu0 %v4570_v40  ;;  %2438 = vpow2.f32 %v1509_v8  ;;  %v4578_v45 = vld [vmem:[#allocation28_spill] sm:$0xff]  ;;  %v4580_v8 = vld [vmem:[#allocation87_spill] sm:$0xff] }
 0x27a   : > { %v3807_v53 = vpop.eup %2414  ;;  %1783 = vmatprep.subr.mxu0 %v4572_v57  ;;  %2440 = vpow2.f32 %v1513_v56  ;;  %v1447_v60 = vsub.f32 %v4580_v8, %v3699_v38  ;;  %v1525_v56 = vmul.f32 1.442695, %v1439_v2  ;;  %v1533_v2 = vmul.f32 1.442695, %v1443_v17 }
 0x27b   : > { %4571 = vst [vmem:[#allocation40_spill] sm:$0xff] %v3807_v53  ;;  %v1666_v27 = vadd.f32 %v3779_v1, %v1665_v20  ;;  %v3813_v55 = vpop.eup %2416  ;;  %1784 = vmatpush1.msra.mxu0 %v4577_v13  ;;  %v1415_v20 = vrot.slane %v1414_v58, 1  ;;  %2442 = vpow2.f32 %v1517_v37  ;;  %v1451_v13 = vsub.f32 %v4584_v47, %v3699_v38 }
 0x27c   : > { %4574 = vst [vmem:[#allocation44_spill] sm:$0xff] %v3813_v55  ;;  %v3820_v0 = vpop.eup %2418  ;;  %v1683_v43 = vadd.f32 %v3813_v55, %v3807_v53  ;;  %1785 = vmatprep.subr.mxu0 %v4578_v45  ;;  %v1529_v45 = vmul.f32 1.442695, %v1441_v26  ;;  %2444 = vpow2.f32 %v1521_v36  ;;  %v1455_v26 = vsub.f32 %v4587_v44, %v3699_v38  ;;  %v4590_v55 = vld [vmem:[#allocation41_spill] sm:$0xff] }
 0x27d   : > { %v1667_v25 = vadd.f32 %v3782_v7, %v1666_v27  ;;  %v3826_v23 = vpop.eup %2420  ;;  %1786 = vmatpush1.msra.mxu0 %v4581_v24  ;;  %v4582_v27 = vld [vmem:[#allocation27_spill] sm:$0xff]  ;;  %v4586_v24 = vld [vmem:[#allocation93_spill] sm:$0xff]  ;;  %v1537_v47 = vmul.f32 1.442695, %v1445_v14  ;;  %2446 = vpow2.f32 %v1525_v56  ;;  %v1541_v36 = vmul.f32 1.442695, %v1447_v60 }
 0x27e   : > { %v3833_v52 = vpop.eup %2422  ;;  %v1684_v40 = vadd.f32 %v3826_v23, %v1683_v43  ;;  %1787 = vmatprep.subr.mxu0 %v4582_v27  ;;  %v1453_v27 = vsub.f32 %v4586_v24, %v3699_v38  ;;  %v4588_v24 = vld [vmem:[#allocation97_spill] sm:$0xff]  ;;  %v4589_v14 = vld [vmem:[#allocation16_spill] sm:$0xff]  ;;  %2448 = vpow2.f32 %v1529_v45  ;;  %v1549_v60 = vmul.f32 1.442695, %v1451_v13 }
 0x27f   : > { %v1668_v22 = vadd.f32 %v3788_v11, %v1667_v25  ;;  %v3838_v57 = vpop.eup %2424  ;;  %1788 = vmatpush1.msra.mxu0 %v4585_v32  ;;  %v3856_v32 = vmax.f32 %v1414_v58, %v1415_v20  ;;  %v1457_v53 = vsub.f32 %v4588_v24, %v3699_v38  ;;  %v1459_v58 = vsub.f32 %v4589_v14, %v3699_v38  ;;  %v4591_v13 = vld [vmem:[#allocation45_spill] sm:$0xff] }
 0x280   : > { %v3845_v8 = vpop.eup %2426  ;;  %v1685_v25 = vadd.f32 %v3838_v57, %v1684_v40  ;;  %1789 = vmatprep.subr.mxu0 %v3833_v52  ;;  %v1545_v20 = vmul.f32 1.442695, %v1449_v54  ;;  %2450 = vpow2.f32 %v1533_v2  ;;  %v1553_v44 = vmul.f32 1.442695, %v1453_v27 }
 0x281   : > { %v1669_v37 = vadd.f32 %v3791_v63, %v1668_v22  ;;  %v3850_v43 = vpop.eup %2428  ;;  %1790 = vmatpush2.msra.mxu0 %v3744_v59  ;;  %2452 = vpow2.f32 %v1537_v47  ;;  %v1557_v24 = vmul.f32 1.442695, %v1455_v26  ;;  %v1418_v14 = vsub.f32 %v4590_v55, %v3856_v32  ;;  %v4592_v47 = vld [vmem:[#allocation59_spill] sm:$0xff] }
 0x282   : > { %v2431_v22 = vpop.eup %2430  ;;  %v1686_v40 = vadd.f32 %v3850_v43, %v1685_v25  ;;  %1791 = vmatprep.subr.mxu0 %v3845_v8  ;;  %2454 = vpow2.f32 %v1541_v36  ;;  %v1420_v45 = vsub.f32 %v4591_v13, %v3856_v32  ;;  %v1461_v27 = vsub.f32 %v4592_v47, %v3699_v38  ;;  %v4593_v36 = vld [vmem:[#allocation48_spill] sm:$0xff]  ;;  %v4597_v47 = vld [vmem:[#allocation55_spill] sm:$0xff] }
 0x283   : > { %v1670_v17 = vadd.f32 %v3797_v49, %v1669_v37  ;;  %v3862_v29 = vpop.eup %2432  ;;  %1792 = vmatpush2.msra.mxu0 %v3733_v51  ;;  %2456 = vpow2.f32 %v1545_v20  ;;  %v1561_v26 = vmul.f32 1.442695, %v1457_v53  ;;  %v4595_v53 = vld [vmem:[#allocation52_spill] sm:$0xff]  ;;  %v1483_v20 = vmul.f32 1.442695, %v1418_v14 }
 0x284   : > { %v2435_v59 = vpop.eup %2434  ;;  %v1687_v37 = vadd.f32 %v3862_v29, %v1686_v40  ;;  %1793 = vmatprep.subr.mxu0 %v2431_v22  ;;  %2458 = vpow2.f32 %v1549_v60  ;;  %v1422_v40 = vsub.f32 %v4593_v36, %v3856_v32  ;;  %v1487_v60 = vmul.f32 1.442695, %v1420_v45  ;;  %v4598_v14 = vld [vmem:[#allocation24_spill] sm:$0xff] }
 0x285   : > { %v1671_v56 = vadd.f32 %v3800_v19, %v1670_v17  ;;  %v3871_v25 = vpop.eup %2436  ;;  %1794 = vmatpush2.msra.mxu0 %v3723_v30  ;;  %v1565_v17 = vmul.f32 1.442695, %v1459_v58  ;;  %2460 = vpow2.f32 %v1553_v44  ;;  %v1424_v58 = vsub.f32 %v4595_v53, %v3856_v32 }
 0x286   : > { %v1688_v54 = vadd.f32 %v3871_v25, %v1687_v37  ;;  %1795 = vmatprep.subr.mxu0 %v2435_v59  ;;  %v3880_v2 = vpop.eup %2438  ;;  %v4594_v37 = vld [vmem:[#allocation19_spill] sm:$0xff]  ;;  %2462 = vpow2.f32 %v1557_v24  ;;  %v1569_v44 = vmul.f32 1.442695, %v1461_v27  ;;  %v1426_v36 = vsub.f32 %v4597_v47, %v3856_v32  ;;  %v4599_v27 = vld [vmem:[#allocation58_spill] sm:$0xff] }
 0x287   : > { %v1672_v51 = vadd.f32 %v3820_v0, %v1671_v56  ;;  %1796 = vmatpush2.msra.mxu0 %v3712_v33  ;;  %v3889_v56 = vpop.eup %2440  ;;  %v1463_v13 = vsub.f32 %v4594_v37, %v3699_v38  ;;  %2464 = vpow2.f32 %v1561_v26  ;;  %v1491_v24 = vmul.f32 1.442695, %v1422_v40 }
 0x288   : > { %v1689_v55 = vadd.f32 %v3880_v2, %v1688_v54  ;;  %1797 = vmatprep.subr.mxu0 %v3820_v0  ;;  %v3898_v0 = vpop.eup %2442  ;;  %2466 = vpow2.f32 %v1565_v17  ;;  %v1467_v45 = vsub.f32 %v4598_v14, %v3699_v38  ;;  %v1495_v17 = vmul.f32 1.442695, %v1424_v58 }
 0x289   : > { %v1673_v30 = vadd.f32 %v2435_v59, %v1672_v51  ;;  %1798 = vmatpush2.msra.mxu0 %v3659_v28  ;;  %v4596_v51 = vld [vmem:[#allocation62_spill] sm:$0xff]  ;;  %v1573_v26 = vmul.f32 1.442695, %v1463_v13  ;;  %2468 = vpow2.f32 %v1483_v20  ;;  %v1499_v58 = vmul.f32 1.442695, %v1426_v36  ;;  %v4605_v36 = vld [vmem:[#allocation67_spill] sm:$0xff] }
 0x28a   : > { %v1690_v59 = vadd.f32 %v3889_v56, %v1689_v55  ;;  %1799 = vmatprep.subr.mxu0 %v3800_v19  ;;  %v1465_v54 = vsub.f32 %v4596_v51, %v3699_v38  ;;  %v3908_v19 = vpop.eup %2444  ;;  %2470 = vpow2.f32 %v1487_v60  ;;  %v4601_v55 = vld [vmem:[#allocation33_spill] sm:$0xff]  ;;  %v4603_v20 = vld [vmem:[#allocation42_spill] sm:$0xff]  ;;  %v4604_v51 = vld [vmem:[#allocation64_spill] sm:$0xff] }
 0x28b   : > { %v1674_v33 = vadd.f32 %v2431_v22, %v1673_v30  ;;  %1800 = vmatpush2.msra.mxu0 %v3645_v18  ;;  %v1428_v30 = vsub.f32 %v4599_v27, %v3856_v32  ;;  %v1469_v40 = vsub.f32 %v4601_v55, %v3699_v38  ;;  %2472 = vpow2.f32 %v1569_v44  ;;  %v4609_v27 = vld [vmem:[#allocation70_spill] sm:$0xff] }
 0x28c   : > { %v1691_v22 = vadd.f32 %v3898_v0, %v1690_v59  ;;  %1801 = vmatprep.subr.mxu0 %v3797_v49  ;;  %v3920_v49 = vpop.eup %2446  ;;  %v1577_v37 = vmul.f32 1.442695, %v1465_v54  ;;  %2474 = vpow2.f32 %v1491_v24  ;;  %v1581_v59 = vmul.f32 1.442695, %v1467_v45  ;;  %v4607_v24 = vld [vmem:[#allocation88_spill] sm:$0xff]  ;;  %v4611_v55 = vld [vmem:[#allocation86_spill] sm:$0xff] }
 0x28d   : > { %v1675_v28 = vadd.f32 %v3845_v8, %v1674_v33  ;;  %1802 = vmatpush2.msra.mxu0 %v3629_v34  ;;  %v3925_v13 = vpop.eup %2448  ;;  %v1471_v33 = vsub.f32 %v4603_v20, %v3699_v38  ;;  %2476 = vpow2.f32 %v1573_v26  ;;  %v1432_v54 = vsub.f32 %v4604_v51, %v3856_v32 }
 0x28e   : > { %v1692_v8 = vadd.f32 %v3908_v19, %v1691_v22  ;;  %1803 = vmatprep.subr.mxu0 %v3791_v63  ;;  %v3931_v63 = vpop.eup %2450  ;;  %2478 = vpow2.f32 %v1495_v17  ;;  %v1503_v44 = vmul.f32 1.442695, %v1428_v30  ;;  %v1585_v47 = vmul.f32 1.442695, %v1469_v40 }
 0x28f   : > { %v3916_v18 = vadd.f32 %v3833_v52, %v1675_v28  ;;  %1804 = vmatpush2.msra.mxu0 %v3617_v62  ;;  %v4602_v52 = vld [vmem:[#allocation61_spill] sm:$0xff]  ;;  %v3936_v62 = vpop.eup %2452  ;;  %2480 = vpow2.f32 %v1577_v37  ;;  %v1434_v28 = vsub.f32 %v4605_v36, %v3856_v32  ;;  %v1448_v14 = vsub.f32 %v4607_v24, %v3856_v32  ;;  %v4617_v24 = vld [vmem:[#allocation79_spill] sm:$0xff] }
 0x290   : > { %v1693_v34 = vadd.f32 %v3920_v49, %v1692_v8  ;;  %v1430_v53 = vsub.f32 %v4602_v52, %v3856_v32  ;;  %1805 = vmatprep.subr.mxu0 %v3788_v11  ;;  %v3942_v11 = vpop.eup %2454  ;;  %2482 = vpow2.f32 %v1499_v58  ;;  %v1589_v26 = vmul.f32 1.442695, %v1471_v33  ;;  %v4610_v8 = vld [vmem:[#allocation25_spill] sm:$0xff]  ;;  %v4613_v58 = vld [vmem:[#allocation23_spill] sm:$0xff] }
 0x291   : > { %4600 = vst [vmem:[#allocation47_spill] sm:$0xff] %v3916_v18  ;;  %1806 = vmatpush2.msra.mxu0 %v3607_v35  ;;  %v3947_v35 = vpop.eup %2456  ;;  %2484 = vpow2.f32 %v1581_v59  ;;  %v1436_v30 = vsub.f32 %v4609_v27, %v3856_v32  ;;  %v1446_v40 = vsub.f32 %v4611_v55, %v3856_v32  ;;  %v1511_v37 = vmul.f32 1.442695, %v1432_v54  ;;  %v4614_v59 = vld [vmem:[#allocation82_spill] sm:$0xff]  ;;  %v4615_v54 = vld [vmem:[#allocation76_spill] sm:$0xff]  ;;  %v4616_v36 = vld [vmem:[#allocation21_spill] sm:$0xff] }
 0x292   : > { %v1694_v60 = vadd.f32 %v3925_v13, %v1693_v34  ;;  %1807 = vmatprep.subr.mxu0 %v3782_v7  ;;  %4606 = vst [vmem:[#allocation51_spill] sm:$0xff] %v3947_v35  ;;  %v1507_v45 = vmul.f32 1.442695, %v1430_v53  ;;  %v3953_v7 = vpop.eup %2458  ;;  %2486 = vpow2.f32 %v1503_v44  ;;  %v4612_v34 = vld [vmem:[#allocation73_spill] sm:$0xff]  ;;  %v1515_v53 = vmul.f32 1.442695, %v1434_v28 }
 0x293   : > { %1808 = vmatpush2.msra.mxu0 %v3598_v15  ;;  %4608 = vst [vmem:[#allocation54_spill] sm:$0xff] %v3953_v7  ;;  %v3958_v15 = vpop.eup %2460  ;;  %2488 = vpow2.f32 %v1585_v47  ;;  %v1438_v52 = vsub.f32 %v4612_v34, %v3856_v32  ;;  %v1543_v51 = vmul.f32 1.442695, %v1448_v14  ;;  %v1440_v44 = vsub.f32 %v4615_v54, %v3856_v32  ;;  %v4622_v54 = vld [vmem:[#allocation14_spill] sm:$0xff] }
 0x294   : > { %v1695_v22 = vadd.f32 %v3931_v63, %v1694_v60  ;;  %1809 = vmatprep.subr.mxu0 %v3779_v1  ;;  %v3964_v1 = vpop.eup %2462  ;;  %v1444_v60 = vsub.f32 %v4614_v59, %v3856_v32  ;;  %2490 = vpow2.f32 %v1507_v45  ;;  %v1519_v47 = vmul.f32 1.442695, %v1436_v30  ;;  %v4618_v45 = vld [vmem:[#allocation83_spill] sm:$0xff] }
 0x295   : > { %1810 = vmatpush2.msra.mxu0 %v4610_v8  ;;  %v3969_v20 = vpop.eup %2464  ;;  %2492 = vpow2.f32 %v1589_v26  ;;  %v1442_v27 = vsub.f32 %v4617_v24, %v3856_v32  ;;  %v1539_v14 = vmul.f32 1.442695, %v1446_v40  ;;  %v1473_v26 = vsub.f32 %v4618_v45, %v3699_v38  ;;  %v4619_v8 = vld [vmem:[#allocation18_spill] sm:$0xff]  ;;  %v4625_v45 = vld [vmem:[#allocation20_spill] sm:$0xff] }
 0x296   : > { %v1696_v17 = vadd.f32 %v3936_v62, %v1695_v22  ;;  %1811 = vmatprep.subr.mxu0 %v3773_v9  ;;  %v3975_v9 = vpop.eup %2466  ;;  %2494 = vpow2.f32 %v1511_v37  ;;  %v1523_v30 = vmul.f32 1.442695, %v1438_v52  ;;  %v1535_v34 = vmul.f32 1.442695, %v1444_v60  ;;  %v4620_v37 = vld [vmem:[#allocation13_spill] sm:$0xff] }
 0x297   : > { %1812 = vmatpush2.msra.mxu0 %v4613_v58  ;;  %v3980_v28 = vpop.eup %2468  ;;  %2496 = vpow2.f32 %v1515_v53  ;;  %v1475_v58 = vsub.f32 %v4620_v37, %v3699_v38  ;;  %v1527_v52 = vmul.f32 1.442695, %v1440_v44  ;;  %v4621_v53 = vld [vmem:[#allocation17_spill] sm:$0xff]  ;;  %v1531_v60 = vmul.f32 1.442695, %v1442_v27  ;;  %v4623_v44 = vld [vmem:[#allocation15_spill] sm:$0xff] }
 0x298   : > { %v1697_v33 = vadd.f32 %v3942_v11, %v1696_v17  ;;  %1813 = vmatprep.subr.mxu0 %v3767_v39  ;;  %v3986_v39 = vpop.eup %2470  ;;  %2498 = vpow2.f32 %v1543_v51 }
 0x299   : > { %1814 = vmatpush2.msra.mxu0 %v4616_v36  ;;  %v3991_v17 = vpop.eup %2472  ;;  %v1720_v40 = vadd.f32 %v3986_v39, %v3980_v28  ;;  %2500 = vpow2.f32 %v1519_v47  ;;  %v1477_v36 = vsub.f32 %v4622_v54, %v3699_v38 }
 0x29a   : > { %v1698_v22 = vadd.f32 %v3947_v35, %v1697_v33  ;;  %1815 = vmatprep.subr.mxu0 %v3761_v46  ;;  %v3997_v46 = vpop.eup %2474  ;;  %2502 = vpow2.f32 %v1539_v14  ;;  %v4017_v14 = vld [vmem:[%s2879_s8] sm:$0xff] }
 0x29b   : > { %1816 = vmatpush2.msra.mxu0 %v4619_v8  ;;  %v4002_v33 = vpop.eup %2476  ;;  %v1721_v51 = vadd.f32 %v3997_v46, %v1720_v40  ;;  %2504 = vpow2.f32 %v1523_v30  ;;  %4624 = vst [vmem:[#allocation57_spill] sm:$0xff] %v4017_v14  ;;  %v1479_v8 = vsub.f32 %v4625_v45, %v3699_v38  ;;  %v4626_v30 = vmov 0.0   ;;  %v4627_v38 = vld [vmem:[#allocation90_spill] sm:$0xff] }
 0x29c   : > { %v1699_v55 = vadd.f32 %v3953_v7, %v1698_v22  ;;  %1817 = vmatprep.subr.mxu0 %v3756_v48  ;;  %v4007_v48 = vpop.eup %2478  ;;  %v1593_v22 = vmul.f32 1.442695, %v1473_v26  ;;  %2506 = vpow2.f32 %v1535_v34  ;;  %v1597_v26 = vmul.f32 1.442695, %v1475_v58 }
 0x29d   : > { %1818 = vmatpush2.msra.mxu0 %v4621_v53  ;;  %v4012_v47 = vpop.eup %2480  ;;  %v1722_v27 = vadd.f32 %v4007_v48, %v1721_v51  ;;  %2508 = vpow2.f32 %v1527_v52  ;;  %v1601_v53 = vmul.f32 1.442695, %v1477_v36  ;;  %v1450_v52 = vsub.f32 %v4627_v38, %v3856_v32  ;;  %v4628_v36 = vld [vmem:[#allocation92_spill] sm:$0xff] }
 0x29e   : > { %v1700_v59 = vadd.f32 %v3958_v15, %v1699_v55  ;;  %1819 = vmatprep.subr.mxu0 %v3749_v61  ;;  %v4020_v61 = vpop.eup %2482  ;;  %2510 = vpow2.f32 %v1531_v60  ;;  %v1605_v58 = vmul.f32 1.442695, %v1479_v8 }
 0x29f   : > { %1820 = vmatpush2.msra.mxu0 %v4623_v44  ;;  %v4025_v55 = vpop.eup %2484  ;;  %v1723_v34 = vadd.f32 %v4020_v61, %v1722_v27  ;;  %2512 = vpow2.f32 %v1593_v22  ;;  %v1452_v27 = vsub.f32 %v4628_v36, %v3856_v32 }
 0x2a0   : > { %v1701_v24 = vadd.f32 %v3964_v1, %v1700_v59  ;;  %1822 = vmatmul.mubr.f32.vlgmr.msra.gmra.mxu0 %v4017_v14  ;;  %v4029_v37 = vpop.eup %2486  ;;  %2514 = vpow2.f32 %v1597_v26 }
 0x2a1   : > { %2011 = vmatprep.mubr.f32.mxu0 %v4626_v30  ;;  %v4031_v59 = vpop.eup %2488  ;;  %v1724_v54 = vadd.f32 %v4029_v37, %v1723_v34  ;;  %v1454_v30 = vsub.f32 %v3299_v4, %v3856_v32  ;;  %2516 = vpow2.f32 %v1601_v53  ;;  %v1547_v34 = vmul.f32 1.442695, %v1450_v52 }
 0x2a2   : > { %v1702_v40 = vadd.f32 %v3969_v20, %v1701_v24  ;;  %v4037_v44 = vpop.eup %2490  ;;  %2518 = vpow2.f32 %v1605_v58  ;;  %v1551_v18 = vmul.f32 1.442695, %v1452_v27  ;;  %v1458_v52 = vsub.f32 %v4546_v41, %v3856_v32 }
 0x2a3   : > { %v4039_v24 = vpop.eup %2492  ;;  %v1725_v22 = vadd.f32 %v4037_v44, %v1724_v54  ;;  %2520 = vpow2.f32 %v1547_v34  ;;  %v1460_v27 = vsub.f32 %v4545_v42, %v3856_v32  ;;  %v1462_v34 = vsub.f32 %v3351_v12, %v3856_v32 }
 0x2a4   : > { %v1703_v51 = vadd.f32 %v3975_v9, %v1702_v40  ;;  %v4045_v45 = vpop.eup %2494  ;;  %2522 = vpow2.f32 %v1551_v18  ;;  %v1464_v18 = vsub.f32 %v3367_v10, %v3856_v32 }
 0x2a5   : > { %v4049_v40 = vpop.eup %2496  ;;  %v1726_v26 = vadd.f32 %v4045_v45, %v1725_v22 }
 0x2a6   : > { %v1704_v60 = vadd.f32 %v3991_v17, %v1703_v51  ;;  %v4053_v38 = vpop.eup %2498  ;;  %v4629_v51 = vld [vmem:[#allocation96_spill] sm:$0xff] }
 0x2a7   : > { %v1456_v36 = vsub.f32 %v4629_v51, %v3856_v32  ;;  %v2501_v14 = vpop.eup %2500  ;;  %v1727_v4 = vadd.f32 %v4049_v40, %v1726_v26  ;;  %1828 = vmatprep.subr.mxu1 %v4053_v38  ;;  %v1555_v51 = vmul.f32 1.442695, %v1454_v30 }
 0x2a8   : > { %v1705_v8 = vadd.f32 %v4002_v33, %v1704_v60  ;;  %v2503_v53 = vpop.eup %2502  ;;  %1829 = vmatpush1.msra.mxu1 %v3942_v11 }
 0x2a9   : > { %v2505_v60 = vpop.eup %2504  ;;  %v1728_v35 = vadd.f32 %v2501_v14, %v1727_v4  ;;  %1830 = vmatprep.subr.mxu1 %v2503_v53  ;;  %v1559_v41 = vmul.f32 1.442695, %v1456_v36  ;;  %2524 = vpow2.f32 %v1555_v51  ;;  %v1567_v36 = vmul.f32 1.442695, %v1460_v27  ;;  %v4630_v51 = vld [vmem:[#allocation29_spill] sm:$0xff] }
 0x2aa   : > { %v1706_v54 = vadd.f32 %v4012_v47, %v1705_v8  ;;  %v2507_v58 = vpop.eup %2506  ;;  %1831 = vmatpush1.msra.mxu1 %v3936_v62  ;;  %v1466_v4 = vsub.f32 %v3385_v31, %v3856_v32  ;;  %v1468_v27 = vsub.f32 %v4630_v51, %v3856_v32 }
 0x2ab   : > { %v2509_v8 = vpop.eup %2508  ;;  %v1729_v7 = vadd.f32 %v2505_v60, %v1728_v35  ;;  %1832 = vmatprep.subr.mxu1 %v2507_v58  ;;  %2526 = vpow2.f32 %v1559_v41 }
 0x2ac   : > { %v1707_v22 = vadd.f32 %v4025_v55, %v1706_v54  ;;  %v2511_v11 = vpop.eup %2510  ;;  %1833 = vmatpush1.msra.mxu1 %v3931_v63  ;;  %v1563_v54 = vmul.f32 1.442695, %v1458_v52  ;;  %v1579_v41 = vmul.f32 1.442695, %v1466_v4 }
 0x2ad   : > { %v1730_v42 = vadd.f32 %v2509_v8, %v1729_v7  ;;  %1834 = vmatprep.subr.mxu1 %v2511_v11  ;;  %v4072_v62 = vpop.eup %2512  ;;  %v1480_v7 = vsub.f32 %v3694_v21, %v3856_v32  ;;  %v1575_v21 = vmul.f32 1.442695, %v1464_v18 }
 0x2ae   : > { %v1708_v26 = vadd.f32 %v4031_v59, %v1707_v22  ;;  %1835 = vmatpush1.msra.mxu1 %v3925_v13  ;;  %v4078_v63 = vpop.eup %2514  ;;  %2528 = vpow2.f32 %v1563_v54  ;;  %v1571_v13 = vmul.f32 1.442695, %v1462_v34 }
 0x2af   : > { %v1731_v12 = vadd.f32 %v2511_v11, %v1730_v42  ;;  %1836 = vmatprep.subr.mxu1 %v2509_v8  ;;  %v4086_v22 = vpop.eup %2516  ;;  %v1478_v8 = vsub.f32 %v3546_v3, %v3856_v32  ;;  %2530 = vpow2.f32 %v1567_v36 }
 0x2b0   : > { %v1709_v30 = vadd.f32 %v4039_v24, %v1708_v26  ;;  %1837 = vmatpush1.msra.mxu1 %v3920_v49  ;;  %v4094_v26 = vpop.eup %2518  ;;  %2532 = vpow2.f32 %v1571_v13 }
 0x2b1   : > { %v1732_v52 = vadd.f32 %v2507_v58, %v1731_v12  ;;  %1838 = vmatprep.subr.mxu1 %v2505_v60  ;;  %v1470_v60 = vsub.f32 %v3446_v16, %v3856_v32  ;;  %v1476_v58 = vsub.f32 %v3506_v5, %v3856_v32  ;;  %v1472_v16 = vsub.f32 %v3470_v50, %v3856_v32  ;;  %v4632_v12 = vld [vmem:[#allocation40_spill] sm:$0xff] }
 0x2b2   : > { %v1710_v35 = vadd.f32 %v4072_v62, %v1709_v30  ;;  %1839 = vmatpush1.msra.mxu1 %v3908_v19  ;;  %v1607_v19 = vmul.f32 1.442695, %v1480_v7  ;;  %v1474_v5 = vsub.f32 %v3490_v6, %v3856_v32  ;;  %2534 = vpow2.f32 %v1575_v21 }
 0x2b3   : > { %v1733_v49 = vadd.f32 %v2503_v53, %v1732_v52  ;;  %1840 = vmatprep.subr.mxu1 %v2501_v14  ;;  %v4106_v14 = vpop.eup %2520  ;;  %v1583_v53 = vmul.f32 1.442695, %v1468_v27  ;;  %2536 = vpow2.f32 %v1579_v41  ;;  %v1599_v30 = vmul.f32 1.442695, %v1476_v58 }
 0x2b4   : > { %v1711_v10 = vadd.f32 %v4078_v63, %v1710_v35  ;;  %1841 = vmatpush1.msra.mxu1 %v3898_v0  ;;  %v1603_v0 = vmul.f32 1.442695, %v1478_v8  ;;  %2538 = vpow2.f32 %v1607_v19  ;;  %v1591_v6 = vmul.f32 1.442695, %v1472_v16  ;;  %v4631_v35 = vld [vmem:[#allocation44_spill] sm:$0xff] }
 0x2b5   : > { %v1734_v11 = vadd.f32 %v4053_v38, %v1733_v49  ;;  %1842 = vmatprep.subr.mxu1 %v4049_v40  ;;  %v4115_v38 = vpop.eup %2522  ;;  %v1587_v40 = vmul.f32 1.442695, %v1470_v60  ;;  %2540 = vpow2.f32 %v1583_v53  ;;  %v1595_v32 = vmul.f32 1.442695, %v1474_v5 }
 0x2b6   : > { %v1712_v31 = vadd.f32 %v4086_v22, %v1711_v10  ;;  %1843 = vmatpush1.msra.mxu1 %v3889_v56  ;;  %v4120_v56 = vpop.eup %2524  ;;  %2542 = vpow2.f32 %v1603_v0 }
 0x2b7   : > { %v1735_v34 = vadd.f32 %v4106_v14, %v1734_v11  ;;  %1844 = vmatprep.subr.mxu1 %v4045_v45  ;;  %2544 = vpow2.f32 %v1587_v40 }
 0x2b8   : > { %v4102_v3 = vadd.f32 %v4094_v26, %v1712_v31  ;;  %1845 = vmatpush1.msra.mxu1 %v3880_v2  ;;  %v4125_v54 = vpop.eup %2526  ;;  %2546 = vpow2.f32 %v1599_v30 }
 0x2b9   : > { %v1736_v50 = vadd.f32 %v4115_v38, %v1735_v34  ;;  %1846 = vmatprep.subr.mxu1 %v4037_v44  ;;  %2548 = vpow2.f32 %v1591_v6 }
 0x2ba   : > { %1847 = vmatpush1.msra.mxu1 %v3871_v25  ;;  %2550 = vpow2.f32 %v1595_v32 }
 0x2bb   : > { %v1737_v45 = vadd.f32 %v4120_v56, %v1736_v50  ;;  %1848 = vmatprep.subr.mxu1 %v4029_v37  ;;  %v2529_v44 = vpop.eup %2528 }
 0x2bc   : > { %1849 = vmatpush1.msra.mxu1 %v3862_v29  ;;  %v2531_v42 = vpop.eup %2530 }
 0x2bd   : > { %v1738_v2 = vadd.f32 %v4125_v54, %v1737_v45  ;;  %1850 = vmatprep.subr.mxu1 %v4020_v61  ;;  %v2533_v29 = vpop.eup %2532 }
 0x2be   : > { %1851 = vmatpush1.msra.mxu1 %v3850_v43 }
 0x2bf   : > { %v1739_v25 = vadd.f32 %v2529_v44, %v1738_v2  ;;  %1852 = vmatprep.subr.mxu1 %v4007_v48  ;;  %v2535_v61 = vpop.eup %2534 }
 0x2c0   : > { %1853 = vmatpush1.msra.mxu1 %v3838_v57  ;;  %v2537_v43 = vpop.eup %2536 }
 0x2c1   : > { %v1740_v37 = vadd.f32 %v2531_v42, %v1739_v25  ;;  %1854 = vmatprep.subr.mxu1 %v3997_v46  ;;  %v2539_v48 = vpop.eup %2538 }
 0x2c2   : > { %1855 = vmatpush1.msra.mxu1 %v3826_v23  ;;  %v2541_v57 = vpop.eup %2540 }
 0x2c3   : > { %v1741_v18 = vadd.f32 %v2533_v29, %v1740_v37  ;;  %1856 = vmatprep.subr.mxu1 %v3986_v39  ;;  %v2543_v46 = vpop.eup %2542 }
 0x2c4   : > { %1857 = vmatpush1.msra.mxu1 %v4631_v35  ;;  %v2545_v23 = vpop.eup %2544 }
 0x2c5   : > { %v1742_v36 = vadd.f32 %v2535_v61, %v1741_v18  ;;  %1858 = vmatprep.subr.mxu1 %v3980_v28  ;;  %v2547_v39 = vpop.eup %2546 }
 0x2c6   : > { %1859 = vmatpush1.msra.mxu1 %v4632_v12  ;;  %v2549_v10 = vpop.eup %2548 }
 0x2c7   : > { %v1743_v4 = vadd.f32 %v2537_v43, %v1742_v36  ;;  %1860 = vmatprep.subr.mxu1 %v2539_v48  ;;  %v2551_v52 = vpop.eup %2550 }
 0x2c8   : > { %1861 = vmatpush2.msra.mxu1 %v4094_v26 }
 0x2c9   : > { %v1744_v7 = vadd.f32 %v2541_v57, %v1743_v4  ;;  %1862 = vmatprep.subr.mxu1 %v2543_v46 }
 0x2ca   : > { %1863 = vmatpush2.msra.mxu1 %v4086_v22 }
 0x2cb   : > { %v1745_v13 = vadd.f32 %v2545_v23, %v1744_v7  ;;  %1864 = vmatprep.subr.mxu1 %v2547_v39 }
 0x2cc   : > { %1865 = vmatpush2.msra.mxu1 %v4078_v63  ;;  %v1714_v63 = vrot.slane %v4102_v3, 4 }
 0x2cd   : > { %v1746_v28 = vadd.f32 %v2549_v10, %v1745_v13  ;;  %1866 = vmatprep.subr.mxu1 %v2551_v52 }
 0x2ce   : > { %1867 = vmatpush2.msra.mxu1 %v4072_v62  ;;  %v1715_v26 = vadd.f32 %v1714_v63, %v4102_v3 }
 0x2cf   : > { %v1747_v51 = vadd.f32 %v2551_v52, %v1746_v28  ;;  %1868 = vmatprep.subr.mxu1 %v2549_v10 }
 0x2d0   : > { %1869 = vmatpush2.msra.mxu1 %v4039_v24  ;;  %v1716_v11 = vrot.slane %v1715_v26, 2 }
 0x2d1   : > { %v1748_v27 = vadd.f32 %v2547_v39, %v1747_v51  ;;  %1870 = vmatprep.subr.mxu1 %v2545_v23  ;;  %v4637_v51 = vld [vmem:[#allocation57_spill] sm:$0xff] }
 0x2d2   : > { %1871 = vmatpush2.msra.mxu1 %v4031_v59  ;;  %v1717_v53 = vadd.f32 %v1716_v11, %v1715_v26 }
 0x2d3   : > { %v1749_v8 = vadd.f32 %v2543_v46, %v1748_v27  ;;  %1872 = vmatprep.subr.mxu1 %v2541_v57 }
 0x2d4   : > { %1873 = vmatpush2.msra.mxu1 %v4025_v55  ;;  %v4636_v55 = vld [vmem:[#allocation47_spill] sm:$0xff]  ;;  %v1718_v0 = vrot.slane %v1717_v53, 1 }
 0x2d5   : > { %v1750_v22 = vadd.f32 %v2539_v48, %v1749_v8  ;;  %1874 = vmatprep.subr.mxu1 %v2537_v43 }
 0x2d6   : > { %1875 = vmatpush2.msra.mxu1 %v4012_v47  ;;  %v1719_v40 = vadd.f32 %v1718_v0, %v1717_v53 }
 0x2d7   : > { %1876 = vmatprep.subr.mxu1 %v2535_v61  ;;  %v1751_v49 = vrot.slane %v1750_v22, 4 }
 0x2d8   : > { %1877 = vmatpush2.msra.mxu1 %v4002_v33  ;;  %v4633_v33 = vld [vmem:[#allocation54_spill] sm:$0xff] }
 0x2d9   : > { %1878 = vmatprep.subr.mxu1 %v2533_v29  ;;  %v1752_v41 = vadd.f32 %v1751_v49, %v1750_v22 }
 0x2da   : > { %1879 = vmatpush2.msra.mxu1 %v3991_v17  ;;  %v4634_v17 = vld [vmem:[#allocation51_spill] sm:$0xff] }
 0x2db   : > { %1880 = vmatprep.subr.mxu1 %v2531_v42  ;;  %v1753_v16 = vrot.slane %v1752_v41, 2 }
 0x2dc   : > { %1881 = vmatpush2.msra.mxu1 %v3975_v9  ;;  %v4160_v9 = vld [vmem:[%s2886_s9] sm:$0xff] }
 0x2dd   : > { %1882 = vmatprep.subr.mxu1 %v2529_v44  ;;  %v1754_v5 = vadd.f32 %v1753_v16, %v1752_v41 }
 0x2de   : > { %1883 = vmatpush2.msra.mxu1 %v3969_v20  ;;  %v4635_v20 = vld [vmem:[#allocation32_spill] sm:$0xff] }
 0x2df   : > { %1884 = vmatprep.subr.mxu1 %v4125_v54  ;;  %v1640_v47 = vrot.slane %v4635_v20, 4  ;;  %v1755_v34 = vrot.slane %v1754_v5, 1 }
 0x2e0   : > { %1885 = vmatpush2.msra.mxu1 %v3964_v1  ;;  %v1677_v1 = vrot.slane %v4636_v55, 4 }
 0x2e1   : > { %1886 = vmatprep.subr.mxu1 %v4120_v56  ;;  %v1641_v59 = vadd.f32 %v1640_v47, %v4635_v20  ;;  %v1756_v30 = vadd.f32 %v1755_v34, %v1754_v5  ;;  %v4639_v20 = vld [vmem:[#allocation12_spill] sm:$0xff] }
 0x2e2   : > { %1887 = vmatpush2.msra.mxu1 %v3958_v15  ;;  %v1678_v15 = vadd.f32 %v1677_v1, %v4636_v55 }
 0x2e3   : > { %1888 = vmatprep.subr.mxu1 %v4115_v38  ;;  %v1642_v24 = vrot.slane %v1641_v59, 2 }
 0x2e4   : > { %1889 = vmatpush2.msra.mxu1 %v4633_v33  ;;  %v1679_v62 = vrot.slane %v1678_v15, 2  ;;  %v4638_v33 = vld [vmem:[#allocation11_spill] sm:$0xff] }
 0x2e5   : > { %1890 = vmatprep.subr.mxu1 %v4106_v14  ;;  %v1643_v31 = vadd.f32 %v1642_v24, %v1641_v59  ;;  %v1937_v59 = vld [vmem:[%s4217_s2] sm:$0x1]  ;;  %v2024_v24 = vlaneseq }
 0x2e6   : > { %1891 = vmatpush2.msra.mxu1 %v4634_v17  ;;  %v1680_v21 = vadd.f32 %v1679_v62, %v1678_v15  ;;  %v2707_v15 = vmov 1966171168  }
 0x2e7   : > { %1893 = vmatmul.mubr.f32.vlgmr.msra.gmra.mxu1 %v4160_v9  ;;  %v1644_v60 = vrot.slane %v1643_v31, 1  ;;  %v2025_v63 = vshrl.u32 %v2024_v24, 7  ;;  %vm2038_vm2 = vcmp.lt.s32.totalorder %v2024_v24, 256 }
 0x2e8   : > { %v1681_v58 = vrot.slane %v1680_v21, 1 }
 0x2e9   : > { %v1645_v19 = vadd.f32 %v1644_v60, %v1643_v31 }
 0x2ea   : > { %v1682_v14 = vadd.f32 %v1681_v58, %v1680_v21 }
 0x2eb   : > { %2552 = vrcp.f32 %v1645_v19 }
 0x2ec   : > { %2554 = vrcp.f32 %v1682_v14 }
 0x2ed   : > { %2556 = vrcp.f32 %v1719_v40 }
 0x2ee   : > { %2558 = vrcp.f32 %v1756_v30 }
 0x2f8   : > { %v2553_v56 = vpop.eup %2552 }
 0x2f9   : > { %v2555_v3 = vpop.eup %2554 }
 0x2fa   : > { %v2557_v25 = vpop.eup %2556 }
 0x2fb   : > { %v2559_v29 = vpop.eup %2558 }
 0x360   : > { %v1823_v38 = vpop.f32.mrf.mxu0 }
 0x361   : > { %v1901_v6 = vmul.f32 %v2553_v56, %v1823_v38 }
 0x362   : > { %v1825_v50 = vpop.f32.mrf.mxu0 }
 0x363   : > { %v1902_v32 = vmul.f32 %v2555_v3, %v1825_v50  ;;  %v1919_v45 = vsub.f32 0.0, %v1901_v6 }
 0x365   : > { %v1920_v54 = vsub.f32 0.0, %v1902_v32  ;;  %v1921_v2 = vmul.f32 1.442695, %v1919_v45 }
 0x367   : > { %v1923_v44 = vmul.f32 1.442695, %v1920_v54  ;;  %2560 = vpow2.f32 %v1921_v2 }
 0x369   : > { %2562 = vpow2.f32 %v1923_v44 }
 0x374   : > { %v2561_v12 = vpop.eup %2560 }
 0x375   : > { %v1925_v4 = vadd.f32 1.0, %v2561_v12 }
 0x376   : > { %v2563_v57 = vpop.eup %2562 }
 0x377   : > { %v1926_v46 = vadd.f32 1.0, %v2563_v57 }
 0x3a7   : > { %v1894_v42 = vpop.f32.mrf.mxu1 }
 0x3a8   : > { %v1905_v37 = vmul.f32 %v2557_v25, %v1894_v42 }
 0x3a9   : > { %v1896_v18 = vpop.f32.mrf.mxu1 }
 0x3aa   : > { %v1907_v61 = vsub.f32 0.0, %v1905_v37  ;;  %v1906_v35 = vmul.f32 %v2559_v29, %v1896_v18 }
 0x3ac   : > { %v1909_v43 = vmul.f32 1.442695, %v1907_v61  ;;  %v1908_v36 = vsub.f32 0.0, %v1906_v35 }
 0x3ae   : > { %2564 = vpow2.f32 %v1909_v43  ;;  %v1911_v48 = vmul.f32 1.442695, %v1908_v36 }
 0x3b0   : > { %2566 = vpow2.f32 %v1911_v48 }
 0x3b1   : > { %2568 = vrcp.f32 %v1925_v4 }
 0x3b2   : > { %2570 = vrcp.f32 %v1926_v46 }
 0x3bb   : > { %v2565_v23 = vpop.eup %2564 }
 0x3bc   : > { %v1913_v7 = vadd.f32 1.0, %v2565_v23 }
 0x3bd   : > { %v2567_v39 = vpop.eup %2566 }
 0x3be   : > { %2572 = vrcp.f32 %v1913_v7  ;;  %v1914_v10 = vadd.f32 1.0, %v2567_v39  ;;  %v2569_v13 = vpop.eup %2568 }
 0x3bf   : > { %v2571_v52 = vpop.eup %2570  ;;  %v1933_v8 = vmul.f32 %v4160_v9, %v2569_v13  ;;  %v2022_v9 = vunpack.c.l.s4 %v2707_v15 }
 0x3c0   : > { %2574 = vrcp.f32 %v1914_v10  ;;  %v1934_v47 = vmul.f32 %v2571_v52, %v4639_v20 }
 0x3c1   : > { %v2023_v62 = vunpack.c.0.s8 %v2022_v9 }
 0x3c3   : > { %v2026_v21 = vsub.s32 %v2023_v62, %v2025_v63 }
 0x3cb   : > { %v2573_v28 = vpop.eup %2572 }
 0x3cc   : > { %v1931_v27 = vmul.f32 %v4637_v51, %v2573_v28 }
 0x3cd   : > { %v2575_v22 = vpop.eup %2574 }
 0x3ce   : > { %v1932_v17 = vmul.f32 %v2575_v22, %v4638_v33  ;;  %v1935_v55 = vadd.f32 %v1933_v8, %v1931_v27 }
 0x3d0   : > { %v1936_v1 = vadd.f32 %v1934_v47, %v1932_v17 }
 0x3d2   : > { %2230 = vmatprep.subr.msk.mxu0 %vm393_vm0, %v1936_v1 }
 0x3d3   : > { %2231 = vmatpush1.msk.msra.mxu0 %vm393_vm0, %v1935_v55 }
 0x3d4   : > { %2232 = vmatmul.mubr.msk.f32.vlgmr.msra.gmra.mxu0 %vm296_vm1, %v1937_v59 }
 0x494   : > { %v2013_v31 = vpop.f32.mrf.mxu0 }
 0x496   : > { %v2015_v49 = vpop.f32.mrf.mxu0 }
 0x497   : > { %v2020_v26 = vcombine.low %v2013_v31, %v2015_v49 }
 0x499   : > { %v2027_v60 = vrot.slane %v2020_v26, %v2026_v21 }
 0x49b   : > { %v2034_v58 = vrot.slane %v2027_v60, %v2026_v21 }
 0x49d   : > { %2040 = vst.msk [vmem:[%s224_s22] sm:$0x3] %vm2038_vm2, %v2034_v58 }
 0x49e   : > { %2647 = shalt.err (!%p2644_p5)
}
 0x49f   : > { %s2648_s6 = scalar_lea.hbm %s2054_s28, 32  ;;  %s2652_s7 = scalar_lea.hbm %s4218_s3, 64 }
 0x4a0   : > { %p2649_p9 = scmp.ne.s32.totalorder %s2054_s28, %s2648_s6  ;;  %p2653_p12 = scmp.lt.s32.totalorder %s2054_s28, %s4218_s3 }
 0x4a1   : > { %p2654_p1 = scmp.lt.s32.totalorder %s2652_s7, %s2648_s6 }
 0x4a2   : > { %p2650_p0 = pnand %p2649_p9, %p4640_p13 }
 0x4a3   : > { %p2655_p3 = por %p2654_p1, %p2653_p12 }
 0x4a4   : > { %p2651_p11 = pneg %p2650_p0 }
 0x4a6   : > { %p2656_p6 = pnand %p2655_p3, %p2651_p11 }
 0x4a8   : > { %2659 = shalt.err (!%p2656_p6)
}
 0x4a9   : > { %2245 = dma.vmem_to_hbm [thread:$0]  (%p4640_p13), %s2057_s29, 32, %s2054_s28, %s2042_s26  }
 0x4aa PF: > { %s2068_s17 = sand.u32 1, %s2690_s12   ;;  %p4641_p7 = scmp.ne.s32.totalorder %s4355_s25, 0 }
 0x4ab   : > { %p4642_p8 = scmp.ge.s32.totalorder %s2702_s15, 2  ;;  %s2069_s20 = scalar_lea.sflag [#allocation4], %s2068_s17 }
 0x4ad   : > { %p2255_p10 = pnand %p4642_p8, %p4641_p7 }
 0x4af   : > { %p2256_p2 = pneg %p2255_p10 }
 0x4b1   : > { %2685 = dma.done.wait (%p2256_p2), %s2069_s20, 32  }
 0x4b2   : > { %2687 = vsyncadd (%p2256_p2), %s2069_s20, 4294967264  ;;  %p19_p4 = scmp.ge.s32.totalorder %s2754_s18, 4   ;;  %s4643_s12 = smov %s2694_s13 }
 0x4b3   : > { %s4644_s13 = smov %s2698_s14  ;;  %s4645_s14 = smov %s2766_s21 }
 0x4b4   : > { %s4646_s15 = smov %s2754_s18  ;;  %21 = sbr.rel (!%p19_p4) target bundleno = 7 (0x7), region = 90 }
 0x4b9   :  { %2074 = vsyncpa [#allocation3], 1 }
 0x4ba   :  { %2076 = vsyncpa [#allocation3 + $0x1], 1 }
 0x4bb   :  { %2077 = vsyncpa [#allocation6], 1 }
 0x4bc   :  { %2079 = vsyncpa [#allocation6 + $0x1], 1 }
 0x4bd   :  { %2080 = vsyncpa [#allocation4], 1 }
 0x4be   :  { %2082 = vsyncpa [#allocation4 + $0x1], 1 }

</bundles_post_ra>
